<compile_context>
chip_gen: v7x
topology: tpu7x:2x2x1
jax: 0.10.0
libtpu: 0.0.40
codegen_flags: <defaults>
</compile_context>

<pallas_src>
import functools
import math

import numpy as np
import jax
import jax.numpy as jnp
from jax import lax
from jax.experimental import pallas as pl
from jax.experimental.pallas import tpu as pltpu


def lambda_init_fn(depth):
    return 0.8 - 0.6 * math.exp(-0.3 * depth)


def _rms(x, g, eps):
    return x * lax.rsqrt(jnp.mean(x * x, axis=-1, keepdims=True) + eps) * g


# ----------------------------- Pallas kernel --------------------------------


def diff_attn_kernel(x_ref, w_ref, cos_ref, sin_ref, g1_ref, g2_ref, gs_ref,
                     lam_ref, o_ref, *, num_heads, head_dim, lambda_init, eps):
    Bblk, T, E = x_ref.shape
    H = num_heads
    hd = head_dim
    H2 = 2 * H

    x = x_ref[...]                                   # (Bblk, T, E)

    # norm1 (RMSNorm over E)
    xn = _rms(x, g1_ref[0], eps)

    # Single fused projection: (Bblk*T, E) @ (E, 5E).
    # Column layout: [ q*scale | k | (q*scale)@R | k@R | v ]
    proj = jnp.dot(xn.reshape(Bblk * T, E), w_ref[...],
                   preferred_element_type=jnp.float32)
    proj = proj.reshape(Bblk, T, 5 * E)

    # Interleaved RoPE on q||k as two lane-wide FMAs:
    #   rope(t) = t*cos + (t@R)*sin, both linear halves precomputed in `proj`.
    qk = (proj[:, :, 0:2 * E] * cos_ref[...][None]
          + proj[:, :, 2 * E:4 * E] * sin_ref[...][None])
    q = qk[:, :, 0:E]
    k = qk[:, :, E:2 * E]
    v = proj[:, :, 4 * E:5 * E]

    # Head/branch-major relayout: group index g = (b, h, branch) flattened.
    qh = jnp.transpose(q.reshape(Bblk, T, H2, hd),
                       (0, 2, 1, 3)).reshape(Bblk * H2, T, hd)
    kh = jnp.transpose(k.reshape(Bblk, T, H2, hd),
                       (0, 2, 1, 3)).reshape(Bblk * H2, T, hd)
    # v per head (cat([v1, v2], -1) is contiguous), broadcast to both branches.
    vh = jnp.transpose(v.reshape(Bblk, T, H, 2 * hd), (0, 2, 1, 3))  # (Bblk,H,T,2hd)
    vh = jnp.broadcast_to(vh[:, :, None, :, :],
                          (Bblk, H, 2, T, 2 * hd)).reshape(Bblk * H2, T, 2 * hd)

    # One batched score matmul for all (batch, head, branch) groups.
    # head_dim**-0.5 was folded into Wq on the host.
    s = jnp.einsum('gtd,gsd->gts', qh, kh,
                   preferred_element_type=jnp.float32)           # (G, T, T)
    s = s - jnp.max(s, axis=-1, keepdims=True)
    e = jnp.exp(s)
    p = e / jnp.sum(e, axis=-1, keepdims=True)                   # exact divide
    a = jnp.einsum('gts,gse->gte', p, vh,
                   preferred_element_type=jnp.float32)           # (G, T, 2hd)

    # Differential combine, subln, output scaling.
    a = a.reshape(Bblk, H, 2, T, 2 * hd)
    lam = lam_ref[0]                                             # SMEM scalar
    d = a[:, :, 0] - lam * a[:, :, 1]                            # (Bblk, H, T, 2hd)
    d = _rms(d, gs_ref[0], eps) * (1.0 - lambda_init)

    # Lane-dense (Bblk, T, E) result; residual + norm2; single full-tile store.
    attn = jnp.transpose(d, (0, 2, 1, 3)).reshape(Bblk, T, E)
    y = attn + x                                                 # dropout = identity
    o_ref[...] = _rms(y, g2_ref[0], eps)


# ------------------------------ host wrapper ---------------------------------


def diff_attn_layer(x_bct, kparams, *, num_heads, head_dim, lambda_init,
                    eps=1e-5):
    """x_bct: (B, hidden_dim, seq_len) -> (B, hidden_dim, seq_len)."""
    B, E, T = x_bct.shape
    # NOTE: at production shapes consider accepting (B, T, E) directly so these
    # transposes do not add an extra HBM round trip around the kernel.
    x = jnp.transpose(x_bct, (0, 2, 1))              # (B, T, E)

    w_all, cos2, sin2, g1, g2, gs, lam = kparams
    full2 = lambda b: (0, 0)

    out = pl.pallas_call(
        functools.partial(diff_attn_kernel, num_heads=num_heads,
                          head_dim=head_dim, lambda_init=lambda_init, eps=eps),
        out_shape=jax.ShapeDtypeStruct((B, T, E), jnp.float32),
        grid=(B,),
        in_specs=[
            pl.BlockSpec((1, T, E), lambda b: (b, 0, 0)),         # x
            pl.BlockSpec((E, 5 * E), full2),                      # fused W_all
            pl.BlockSpec((T, 2 * E), full2),                      # cos (q||k lanes)
            pl.BlockSpec((T, 2 * E), full2),                      # sin (q||k lanes)
            pl.BlockSpec((1, E), full2),                          # norm1 weight
            pl.BlockSpec((1, E), full2),                          # norm2 weight
            pl.BlockSpec((1, 2 * head_dim), full2),               # subln weight
            pl.BlockSpec(memory_space=pltpu.MemorySpace.SMEM),    # lambda_full
        ],
        out_specs=pl.BlockSpec((1, T, E), lambda b: (b, 0, 0)),
        compiler_params=pltpu.CompilerParams(
            dimension_semantics=("parallel",),
            vmem_limit_bytes=64 * 1024 * 1024),
    )(x, w_all, cos2, sin2, g1, g2, gs, lam)

    return jnp.transpose(out, (0, 2, 1))


def build_kernel_params(wq, wk, wv, lq1, lk1, lq2, lk2, g1, g2, gs, cos, sin,
                        *, num_heads, head_dim, lambda_init):
    """Host-side precompute: fused weight matrix, expanded rotary tables, lambda."""
    E = wq.shape[0]
    hd = head_dim
    scale = hd ** (-0.5)

    # Fixed interleaved pair-swap/sign matrix R:
    #   (x@R)[2i] = -x[2i+1],  (x@R)[2i+1] = x[2i]
    rot_np = np.zeros((E, E), np.float32)
    for i in range(E // 2):
        rot_np[2 * i + 1, 2 * i] = -1.0
        rot_np[2 * i, 2 * i + 1] = 1.0
    rot = jnp.asarray(rot_np)

    wqT = wq.T * scale            # fold head_dim**-0.5 into q projection
    wkT = wk.T
    wvT = wv.T
    w_all = jnp.concatenate([wqT, wkT, wqT @ rot, wkT @ rot, wvT], axis=1)  # (E, 5E)

    # cos/sin expanded to the (q||k) lane layout: (T, 2E)
    cosE = jnp.tile(jnp.repeat(cos, 2, axis=-1), (1, 2 * num_heads))        # (T, E)
    sinE = jnp.tile(jnp.repeat(sin, 2, axis=-1), (1, 2 * num_heads))
    cos2 = jnp.concatenate([cosE, cosE], axis=-1)
    sin2 = jnp.concatenate([sinE, sinE], axis=-1)

    lambda_full = (jnp.exp(jnp.sum(lq1 * lk1))
                   - jnp.exp(jnp.sum(lq2 * lk2)) + lambda_init)
    lam = lambda_full.reshape(1).astype(jnp.float32)                        # SMEM scalar

    return (w_all.astype(jnp.float32), cos2.astype(jnp.float32),
            sin2.astype(jnp.float32), g1[None, :], g2[None, :], gs[None, :], lam)


# ------------------------- pure-JAX reference (check) ------------------------


def reference_forward(x_bct, p, *, num_heads, head_dim, lambda_init, eps=1e-5):
    B, E, T = x_bct.shape
    H, hd = num_heads, head_dim
    x = jnp.transpose(x_bct, (0, 2, 1))            # (B, T, E)
    shortcut = x
    xn = _rms(x, p["g1"], eps)

    q = xn @ p["wq"].T
    k = xn @ p["wk"].T
    v = xn @ p["wv"].T
    q = q.reshape(B, T, 2 * H, hd)
    k = k.reshape(B, T, 2 * H, hd)

    cos, sin = p["cos"], p["sin"]                  # (T, hd//2)

    def rope(t):
        t1, t2 = t[..., 0::2], t[..., 1::2]
        c = cos[None, :, None, :]
        s = sin[None, :, None, :]
        o1 = t1 * c - t2 * s
        o2 = t1 * s + t2 * c
        return jnp.stack([o1, o2], axis=-1).reshape(t.shape)

    q, k = rope(q), rope(k)
    q = q.reshape(B, T, H, 2, hd)
    k = k.reshape(B, T, H, 2, hd)
    q1, q2 = q[..., 0, :], q[..., 1, :]
    k1, k2 = k[..., 0, :], k[..., 1, :]
    vcat = v.reshape(B, T, H, 2 * hd)
    scale = hd ** (-0.5)

    def attn(qq, kk):
        s = jnp.einsum('bthd,bshd->bhts', qq, kk) * scale
        pm = jax.nn.softmax(s, axis=-1)
        return jnp.einsum('bhts,bshe->bthe', pm, vcat)

    a1 = attn(q1, k1)
    a2 = attn(q2, k2)
    lam = (jnp.exp(jnp.sum(p["lq1"] * p["lk1"]))
           - jnp.exp(jnp.sum(p["lq2"] * p["lk2"])) + lambda_init)
    d = a1 - lam * a2
    d = _rms(d, p["gs"], eps)
    d = d * (1.0 - lambda_init)
    attn_out = d.reshape(B, T, H * 2 * hd)
    y = _rms(attn_out + shortcut, p["g2"], eps)
    return jnp.transpose(y, (0, 2, 1))


# ----------------------------------- main ------------------------------------


if __name__ == "__main__":
    # Small shapes consistent with the module.
    B, E, T = 2, 64, 16          # batch, hidden_dim, seq_len
    H = 2                        # num_heads
    depth = 1
    max_seq_len = 32
    hd = E // H // 2             # head_dim = 16
    lambda_init = lambda_init_fn(depth)

    key = jax.random.PRNGKey(0)
    ks = jax.random.split(key, 8)

    def xavier(k, shape):
        bound = float(np.sqrt(6.0 / (shape[0] + shape[1])))
        return jax.random.uniform(k, shape, jnp.float32, -bound, bound)

    wq = xavier(ks[0], (E, E))
    wk = xavier(ks[1], (E, E))
    wv = xavier(ks[2], (E, E))
    lq1 = 0.1 * jax.random.normal(ks[3], (hd,), jnp.float32)
    lk1 = 0.1 * jax.random.normal(ks[4], (hd,), jnp.float32)
    lq2 = 0.1 * jax.random.normal(ks[5], (hd,), jnp.float32)
    lk2 = 0.1 * jax.random.normal(ks[6], (hd,), jnp.float32)
    g1 = jnp.ones((E,), jnp.float32)
    g2 = jnp.ones((E,), jnp.float32)
    gs = jnp.ones((2 * hd,), jnp.float32)
    x_bct = jax.random.normal(ks[7], (B, E, T), jnp.float32)

    # Rotary tables (as in MultiheadFlashDiff2.__init__ / build_rel_pos).
    angle = 1.0 / (10000.0 ** jnp.linspace(0.0, 1.0, hd // 2))
    idx = jnp.arange(max_seq_len, dtype=jnp.float32)
    freqs = idx[:, None] * angle[None, :]          # (max_seq_len, hd//2)
    cos = jnp.cos(freqs[:T]).astype(jnp.float32)
    sin = jnp.sin(freqs[:T]).astype(jnp.float32)

    kparams = build_kernel_params(wq, wk, wv, lq1, lk1, lq2, lk2,
                                  g1, g2, gs, cos, sin,
                                  num_heads=H, head_dim=hd,
                                  lambda_init=lambda_init)

    out = diff_attn_layer(x_bct, kparams, num_heads=H, head_dim=hd,
                          lambda_init=lambda_init)
    out = jax.block_until_ready(out)

    ref_params = {"wq": wq, "wk": wk, "wv": wv, "lq1": lq1, "lk1": lk1,
                  "lq2": lq2, "lk2": lk2, "g1": g1, "g2": g2, "gs": gs,
                  "cos": cos, "sin": sin}
    ref = reference_forward(x_bct, ref_params, num_heads=H, head_dim=hd,
                            lambda_init=lambda_init)

    np.testing.assert_allclose(np.asarray(out), np.asarray(ref),
                               rtol=1e-3, atol=1e-3)
    print("KERNEL_OK")
</pallas_src>

<mosaic_0001>
module attributes {stable_mosaic.version = 11 : i64} {
  func.func @diff_attn_kernel(%arg0: i32, %arg1: memref<1x16x64xf32, #tpu.memory_space<vmem>>, %arg2: memref<64x320xf32, #tpu.memory_space<vmem>>, %arg3: memref<16x128xf32, #tpu.memory_space<vmem>>, %arg4: memref<16x128xf32, #tpu.memory_space<vmem>>, %arg5: memref<1x64xf32, #tpu.memory_space<vmem>>, %arg6: memref<1x64xf32, #tpu.memory_space<vmem>>, %arg7: memref<1x32xf32, #tpu.memory_space<vmem>>, %arg8: memref<1xf32, #tpu.memory_space<smem>>, %arg9: memref<1x16x64xf32, #tpu.memory_space<vmem>>) attributes {dimension_semantics = [#tpu.dimension_semantics<parallel>], iteration_bounds = array<i64: 2>, scalar_prefetch = 0 : i64, scratch_operands = 0 : i64, tpu.core_type = #tpu.core_type<tc>, window_params = [{transform_indices = @transform_0, window_bounds = array<i64: 1, 16, 64>}, {pipeline_mode = #tpu.pipeline_mode<synchronous>, transform_indices = @transform_1, window_bounds = array<i64: 64, 320>}, {pipeline_mode = #tpu.pipeline_mode<synchronous>, transform_indices = @transform_2, window_bounds = array<i64: 16, 128>}, {pipeline_mode = #tpu.pipeline_mode<synchronous>, transform_indices = @transform_3, window_bounds = array<i64: 16, 128>}, {pipeline_mode = #tpu.pipeline_mode<synchronous>, transform_indices = @transform_4, window_bounds = array<i64: 1, 64>}, {pipeline_mode = #tpu.pipeline_mode<synchronous>, transform_indices = @transform_5, window_bounds = array<i64: 1, 64>}, {pipeline_mode = #tpu.pipeline_mode<synchronous>, transform_indices = @transform_6, window_bounds = array<i64: 1, 32>}, {transform_indices = @transform_7, window_bounds = array<i64: 1>}, {transform_indices = @transform_8, window_bounds = array<i64: 1, 16, 64>}]} {
    %c0 = arith.constant 0 : index
    %c0_0 = arith.constant 0 : index
    %c0_1 = arith.constant 0 : index
    %0 = vector.load %arg1[%c0, %c0_0, %c0_1] : memref<1x16x64xf32, #tpu.memory_space<vmem>>, vector<1x16x64xf32>
    %c0_2 = arith.constant 0 : index
    %c0_3 = arith.constant 0 : index
    %1 = vector.load %arg5[%c0_2, %c0_3] : memref<1x64xf32, #tpu.memory_space<vmem>>, vector<1x64xf32>
    %2 = vector.shape_cast %1 : vector<1x64xf32> to vector<64xf32>
    %3 = arith.mulf %0, %0 : vector<1x16x64xf32>
    %cst = arith.constant dense<0.000000e+00> : vector<1x16xf32>
    %4 = vector.multi_reduction <add>, %3, %cst [2] : vector<1x16x64xf32> to vector<1x16xf32>
    %5 = vector.shape_cast %4 : vector<1x16xf32> to vector<1x16x1xf32>
    %cst_4 = arith.constant 6.400000e+01 : f32
    %6 = vector.broadcast %cst_4 : f32 to vector<1x16x1xf32>
    %7 = arith.divf %5, %6 : vector<1x16x1xf32>
    %cst_5 = arith.constant 9.99999974E-6 : f32
    %8 = vector.broadcast %cst_5 : f32 to vector<1x16x1xf32>
    %9 = arith.addf %7, %8 : vector<1x16x1xf32>
    %10 = math.rsqrt %9 : vector<1x16x1xf32>
    %11 = vector.broadcast %10 : vector<1x16x1xf32> to vector<1x16x64xf32>
    %12 = arith.mulf %0, %11 : vector<1x16x64xf32>
    %13 = vector.shape_cast %2 : vector<64xf32> to vector<1x1x64xf32>
    %14 = vector.broadcast %13 : vector<1x1x64xf32> to vector<1x16x64xf32>
    %15 = arith.mulf %12, %14 : vector<1x16x64xf32>
    %16 = vector.shape_cast %15 : vector<1x16x64xf32> to vector<16x64xf32>
    %c0_6 = arith.constant 0 : index
    %c0_7 = arith.constant 0 : index
    %17 = vector.load %arg2[%c0_6, %c0_7] : memref<64x320xf32, #tpu.memory_space<vmem>>, vector<64x320xf32>
    %cst_8 = arith.constant dense<0.000000e+00> : vector<16x320xf32>
    %18 = tpu.matmul %16, %17, %cst_8 {dimension_numbers = #tpu.dot_dimension_numbers<[1], [0], [0], [1], [0, 0, 1, 1], [], []>} : vector<16x64xf32>, vector<64x320xf32>, vector<16x320xf32> -> vector<16x320xf32>
    %19 = vector.shape_cast %18 : vector<16x320xf32> to vector<1x16x320xf32>
    %20 = vector.extract_strided_slice %19 {offsets = [0, 0, 0], sizes = [1, 16, 128], strides = [1, 1, 1]} : vector<1x16x320xf32> to vector<1x16x128xf32>
    %c0_9 = arith.constant 0 : index
    %c0_10 = arith.constant 0 : index
    %21 = vector.load %arg3[%c0_9, %c0_10] : memref<16x128xf32, #tpu.memory_space<vmem>>, vector<16x128xf32>
    %22 = vector.shape_cast %21 : vector<16x128xf32> to vector<1x16x128xf32>
    %23 = arith.mulf %20, %22 : vector<1x16x128xf32>
    %24 = vector.extract_strided_slice %19 {offsets = [0, 0, 128], sizes = [1, 16, 128], strides = [1, 1, 1]} : vector<1x16x320xf32> to vector<1x16x128xf32>
    %c0_11 = arith.constant 0 : index
    %c0_12 = arith.constant 0 : index
    %25 = vector.load %arg4[%c0_11, %c0_12] : memref<16x128xf32, #tpu.memory_space<vmem>>, vector<16x128xf32>
    %26 = vector.shape_cast %25 : vector<16x128xf32> to vector<1x16x128xf32>
    %27 = arith.mulf %24, %26 : vector<1x16x128xf32>
    %28 = arith.addf %23, %27 : vector<1x16x128xf32>
    %29 = vector.extract_strided_slice %28 {offsets = [0, 0, 0], sizes = [1, 16, 64], strides = [1, 1, 1]} : vector<1x16x128xf32> to vector<1x16x64xf32>
    %30 = vector.extract_strided_slice %28 {offsets = [0, 0, 64], sizes = [1, 16, 64], strides = [1, 1, 1]} : vector<1x16x128xf32> to vector<1x16x64xf32>
    %31 = vector.extract_strided_slice %19 {offsets = [0, 0, 256], sizes = [1, 16, 64], strides = [1, 1, 1]} : vector<1x16x320xf32> to vector<1x16x64xf32>
    %32 = vector.shape_cast %29 : vector<1x16x64xf32> to vector<1x16x4x16xf32>
    %33 = tpu.transpose %32, [0, 2, 1, 3] : vector<1x16x4x16xf32> -> vector<1x4x16x16xf32>
    %34 = vector.shape_cast %33 : vector<1x4x16x16xf32> to vector<4x16x16xf32>
    %35 = vector.shape_cast %30 : vector<1x16x64xf32> to vector<1x16x4x16xf32>
    %36 = tpu.transpose %35, [0, 2, 1, 3] : vector<1x16x4x16xf32> -> vector<1x4x16x16xf32>
    %37 = vector.shape_cast %36 : vector<1x4x16x16xf32> to vector<4x16x16xf32>
    %38 = vector.shape_cast %31 : vector<1x16x64xf32> to vector<1x16x2x32xf32>
    %39 = tpu.transpose %38, [0, 2, 1, 3] : vector<1x16x2x32xf32> -> vector<1x2x16x32xf32>
    %40 = vector.shape_cast %39 : vector<1x2x16x32xf32> to vector<1x2x1x16x32xf32>
    %41 = vector.shape_cast %40 : vector<1x2x1x16x32xf32> to vector<1x2x1x16x32xf32>
    %42 = vector.broadcast %41 : vector<1x2x1x16x32xf32> to vector<1x2x2x16x32xf32>
    %43 = vector.shape_cast %42 : vector<1x2x2x16x32xf32> to vector<4x16x32xf32>
    "tpu.trace_start"() <{level = 10 : i32, message = "gtd,gsd->gts"}> : () -> ()
    %cst_13 = arith.constant dense<0.000000e+00> : vector<4x16x16xf32>
    %44 = tpu.matmul %34, %37, %cst_13 {dimension_numbers = #tpu.dot_dimension_numbers<[2], [2], [1], [1], [0, 0, 0, 1, 1, 1], [0], [0]>} : vector<4x16x16xf32>, vector<4x16x16xf32>, vector<4x16x16xf32> -> vector<4x16x16xf32>
    "tpu.trace_stop"() : () -> ()
    %cst_14 = arith.constant dense<0xFF800000> : vector<4x16xf32>
    %45 = vector.multi_reduction <maximumf>, %44, %cst_14 [2] : vector<4x16x16xf32> to vector<4x16xf32>
    %46 = vector.shape_cast %45 : vector<4x16xf32> to vector<4x16x1xf32>
    %47 = vector.broadcast %46 : vector<4x16x1xf32> to vector<4x16x16xf32>
    %48 = arith.subf %44, %47 : vector<4x16x16xf32>
    %49 = math.exp %48 : vector<4x16x16xf32>
    %cst_15 = arith.constant dense<0.000000e+00> : vector<4x16xf32>
    %50 = vector.multi_reduction <add>, %49, %cst_15 [2] : vector<4x16x16xf32> to vector<4x16xf32>
    %51 = vector.shape_cast %50 : vector<4x16xf32> to vector<4x16x1xf32>
    %52 = vector.broadcast %51 : vector<4x16x1xf32> to vector<4x16x16xf32>
    %53 = arith.divf %49, %52 : vector<4x16x16xf32>
    "tpu.trace_start"() <{level = 10 : i32, message = "gts,gse->gte"}> : () -> ()
    %cst_16 = arith.constant dense<0.000000e+00> : vector<4x16x32xf32>
    %54 = tpu.matmul %53, %43, %cst_16 {dimension_numbers = #tpu.dot_dimension_numbers<[2], [1], [1], [2], [0, 0, 0, 1, 1, 2], [0], [0]>} : vector<4x16x16xf32>, vector<4x16x32xf32>, vector<4x16x32xf32> -> vector<4x16x32xf32>
    "tpu.trace_stop"() : () -> ()
    %55 = vector.shape_cast %54 : vector<4x16x32xf32> to vector<1x2x2x16x32xf32>
    %c0_17 = arith.constant 0 : index
    %56 = memref.load %arg8[%c0_17] : memref<1xf32, #tpu.memory_space<smem>>
    %57 = vector.extract_strided_slice %55 {offsets = [0, 0, 0, 0, 0], sizes = [1, 2, 1, 16, 32], strides = [1, 1, 1, 1, 1]} : vector<1x2x2x16x32xf32> to vector<1x2x1x16x32xf32>
    %58 = vector.shape_cast %57 : vector<1x2x1x16x32xf32> to vector<1x2x16x32xf32>
    %59 = vector.extract_strided_slice %55 {offsets = [0, 0, 1, 0, 0], sizes = [1, 2, 1, 16, 32], strides = [1, 1, 1, 1, 1]} : vector<1x2x2x16x32xf32> to vector<1x2x1x16x32xf32>
    %60 = vector.shape_cast %59 : vector<1x2x1x16x32xf32> to vector<1x2x16x32xf32>
    %61 = vector.broadcast %56 : f32 to vector<1x2x16x32xf32>
    %62 = arith.mulf %61, %60 : vector<1x2x16x32xf32>
    %63 = arith.subf %58, %62 : vector<1x2x16x32xf32>
    %c0_18 = arith.constant 0 : index
    %c0_19 = arith.constant 0 : index
    %64 = vector.load %arg7[%c0_18, %c0_19] : memref<1x32xf32, #tpu.memory_space<vmem>>, vector<1x32xf32>
    %65 = vector.shape_cast %64 : vector<1x32xf32> to vector<32xf32>
    %66 = arith.mulf %63, %63 : vector<1x2x16x32xf32>
    %cst_20 = arith.constant dense<0.000000e+00> : vector<1x2x16xf32>
    %67 = vector.multi_reduction <add>, %66, %cst_20 [3] : vector<1x2x16x32xf32> to vector<1x2x16xf32>
    %68 = vector.shape_cast %67 : vector<1x2x16xf32> to vector<1x2x16x1xf32>
    %cst_21 = arith.constant 3.200000e+01 : f32
    %69 = vector.broadcast %cst_21 : f32 to vector<1x2x16x1xf32>
    %70 = arith.divf %68, %69 : vector<1x2x16x1xf32>
    %cst_22 = arith.constant 9.99999974E-6 : f32
    %71 = vector.broadcast %cst_22 : f32 to vector<1x2x16x1xf32>
    %72 = arith.addf %70, %71 : vector<1x2x16x1xf32>
    %73 = math.rsqrt %72 : vector<1x2x16x1xf32>
    %74 = vector.broadcast %73 : vector<1x2x16x1xf32> to vector<1x2x16x32xf32>
    %75 = arith.mulf %63, %74 : vector<1x2x16x32xf32>
    %76 = vector.shape_cast %65 : vector<32xf32> to vector<1x1x1x32xf32>
    %77 = vector.broadcast %76 : vector<1x1x1x32xf32> to vector<1x2x16x32xf32>
    %78 = arith.mulf %75, %77 : vector<1x2x16x32xf32>
    %cst_23 = arith.constant 0.644490957 : f32
    %79 = vector.broadcast %cst_23 : f32 to vector<1x2x16x32xf32>
    %80 = arith.mulf %78, %79 : vector<1x2x16x32xf32>
    %81 = tpu.transpose %80, [0, 2, 1, 3] : vector<1x2x16x32xf32> -> vector<1x16x2x32xf32>
    %82 = vector.shape_cast %81 : vector<1x16x2x32xf32> to vector<1x16x64xf32>
    %83 = arith.addf %82, %0 : vector<1x16x64xf32>
    %c0_24 = arith.constant 0 : index
    %c0_25 = arith.constant 0 : index
    %84 = vector.load %arg6[%c0_24, %c0_25] : memref<1x64xf32, #tpu.memory_space<vmem>>, vector<1x64xf32>
    %85 = vector.shape_cast %84 : vector<1x64xf32> to vector<64xf32>
    %86 = arith.mulf %83, %83 : vector<1x16x64xf32>
    %cst_26 = arith.constant dense<0.000000e+00> : vector<1x16xf32>
    %87 = vector.multi_reduction <add>, %86, %cst_26 [2] : vector<1x16x64xf32> to vector<1x16xf32>
    %88 = vector.shape_cast %87 : vector<1x16xf32> to vector<1x16x1xf32>
    %cst_27 = arith.constant 6.400000e+01 : f32
    %89 = vector.broadcast %cst_27 : f32 to vector<1x16x1xf32>
    %90 = arith.divf %88, %89 : vector<1x16x1xf32>
    %cst_28 = arith.constant 9.99999974E-6 : f32
    %91 = vector.broadcast %cst_28 : f32 to vector<1x16x1xf32>
    %92 = arith.addf %90, %91 : vector<1x16x1xf32>
    %93 = math.rsqrt %92 : vector<1x16x1xf32>
    %94 = vector.broadcast %93 : vector<1x16x1xf32> to vector<1x16x64xf32>
    %95 = arith.mulf %83, %94 : vector<1x16x64xf32>
    %96 = vector.shape_cast %85 : vector<64xf32> to vector<1x1x64xf32>
    %97 = vector.broadcast %96 : vector<1x1x64xf32> to vector<1x16x64xf32>
    %98 = arith.mulf %95, %97 : vector<1x16x64xf32>
    %c0_29 = arith.constant 0 : index
    %c0_30 = arith.constant 0 : index
    %c0_31 = arith.constant 0 : index
    %99 = vector.load %arg9[%c0_29, %c0_30, %c0_31] : memref<1x16x64xf32, #tpu.memory_space<vmem>>, vector<1x16x64xf32>
    tpu.vector_store %arg9[%c0_29, %c0_30, %c0_31], %98 {strides = array<i32>} : memref<1x16x64xf32, #tpu.memory_space<vmem>>, vector<1x16x64xf32>,
    return
  }
  func.func @transform_0(%arg0: i32) -> (i32, i32, i32) {
    %c0_i32 = arith.constant 0 : i32
    %c0_i32_0 = arith.constant 0 : i32
    %c0_i32_1 = arith.constant 0 : i32
    return %arg0, %c0_i32, %c0_i32_0 : i32, i32, i32
  }
  func.func @transform_1(%arg0: i32) -> (i32, i32) {
    %c0_i32 = arith.constant 0 : i32
    %c0_i32_0 = arith.constant 0 : i32
    %c0_i32_1 = arith.constant 0 : i32
    return %c0_i32, %c0_i32_0 : i32, i32
  }
  func.func @transform_2(%arg0: i32) -> (i32, i32) {
    %c0_i32 = arith.constant 0 : i32
    %c0_i32_0 = arith.constant 0 : i32
    %c0_i32_1 = arith.constant 0 : i32
    return %c0_i32, %c0_i32_0 : i32, i32
  }
  func.func @transform_3(%arg0: i32) -> (i32, i32) {
    %c0_i32 = arith.constant 0 : i32
    %c0_i32_0 = arith.constant 0 : i32
    %c0_i32_1 = arith.constant 0 : i32
    return %c0_i32, %c0_i32_0 : i32, i32
  }
  func.func @transform_4(%arg0: i32) -> (i32, i32) {
    %c0_i32 = arith.constant 0 : i32
    %c0_i32_0 = arith.constant 0 : i32
    %c0_i32_1 = arith.constant 0 : i32
    return %c0_i32, %c0_i32_0 : i32, i32
  }
  func.func @transform_5(%arg0: i32) -> (i32, i32) {
    %c0_i32 = arith.constant 0 : i32
    %c0_i32_0 = arith.constant 0 : i32
    %c0_i32_1 = arith.constant 0 : i32
    return %c0_i32, %c0_i32_0 : i32, i32
  }
  func.func @transform_6(%arg0: i32) -> (i32, i32) {
    %c0_i32 = arith.constant 0 : i32
    %c0_i32_0 = arith.constant 0 : i32
    %c0_i32_1 = arith.constant 0 : i32
    return %c0_i32, %c0_i32_0 : i32, i32
  }
  func.func @transform_7(%arg0: i32) -> i32 {
    %c0_i32 = arith.constant 0 : i32
    %c0_i32_0 = arith.constant 0 : i32
    return %c0_i32 : i32
  }
  func.func @transform_8(%arg0: i32) -> (i32, i32, i32) {
    %c0_i32 = arith.constant 0 : i32
    %c0_i32_0 = arith.constant 0 : i32
    %c0_i32_1 = arith.constant 0 : i32
    return %arg0, %c0_i32, %c0_i32_0 : i32, i32, i32
  }
}

</mosaic_0001>

<bundles_post_ra>
// kernel: tpu_custom_call.1
= control target key start
LH: loop header
LB: loop body
LE: loop exit
PB: predicated region body
PF: predicated region fallthrough
CT: control target
= control target key end

     0   :  { %s4131_s0 = inlined_call_operand.hbm [shape: f32[2,16,64], index: 0, kind: input, shape index: {}]   ;;  %s4132_s1 = inlined_call_operand.hbm [shape: f32[64,320], index: 1, kind: input, shape index: {}]   ;;  %s4133_s2 = inlined_call_operand.hbm [shape: f32[16,128], index: 2, kind: input, shape index: {}]   ;;  %s4134_s3 = inlined_call_operand.hbm [shape: f32[16,128], index: 3, kind: input, shape index: {}]   ;;  %s4135_s4 = inlined_call_operand.hbm [shape: f32[1,64], index: 4, kind: input, shape index: {}]   ;;  %s4136_s5 = inlined_call_operand.hbm [shape: f32[1,64], index: 5, kind: input, shape index: {}]   ;;  %s4137_s6 = inlined_call_operand.hbm [shape: f32[1,32], index: 6, kind: input, shape index: {}]   ;;  %s4138_s7 = inlined_call_operand.<no memory space> [shape: f32[1], index: 7, kind: input, shape index: {}]   ;;  %s4139_s8 = inlined_call_operand.hbm [shape: f32[2,16,64], index: 8, kind: output, shape index: {}]  }
   0x1   :  { %13 = sst [smem:[#allocation2]] %s4138_s7 }
   0x2   :  { %14 = vsyncpa [#allocation4], 0 }
   0x3   :  { %16 = vsyncpa [#allocation4 + $0x1], 0 }
   0x4   :  { %17 = vsyncpa [#allocation7], 0 }
   0x5   :  { %18 = vsyncpa [#allocation10], 0 }
   0x6   :  { %19 = vsyncpa [#allocation13], 0 }
   0x7   :  { %20 = vsyncpa [#allocation5], 0 }
   0x8   :  { %22 = vsyncpa [#allocation5 + $0x1], 0  ;;  %s3473_s29 = smov 0   ;;  %s3475_s30 = smov 0  }
   0x9   :  { %s3477_s9 = smov 0   ;;  %s3479_s10 = smov 0  }
   0xa LB: > { %s3403_s7 = smov [#allocation6]   ;;  %s3494_s12 = sadd.s32 4294967295, %s3401_s10   ;;  %s3401_s10 = sphi %s3479_s10, %s4169_s10   ;;  %s3397_s9 = sphi %s3477_s9, %s4168_s9   ;;  %s3393_s30 = sphi %s3475_s30, %s4167_s30   ;;  %s3389_s29 = sphi %s3473_s29, %s4166_s29  }
   0xb   : > { %s244_s11 = sshll.u32 %s3403_s7, 4  ;;  %p2691_p0 = scmp.ge.s32.totalorder %s3401_s10, 1  ;;  %s3499_s11 = int_to_ptr.vmem [resolvable:$true] %s244_s11 }
   0xc   : > { %p4140_p1 = scmp.eq.s32.totalorder %s3494_s12, 0  ;;  %p232_p2 = scmp.lt.s32.totalorder %s3401_s10, 3 }
   0xd   : > { %s3404_s15 = smov [#allocation9]   ;;  %s3405_s17 = smov [#allocation12]  }
   0xe   : > { %p3501_p3 = pnand %p2691_p0, %p232_p2  ;;  %s270_s16 = sshll.u32 %s3404_s15, 4  ;;  %s3514_s16 = int_to_ptr.vmem [resolvable:$true] %s270_s16 }
   0xf   : > { %s3516_s18 = sshll.u32 %s3405_s17, 4  ;;  %s3125_s21 = scalar_lea.hbm %s4132_s1, 3072  ;;  %s296_s18 = int_to_ptr.vmem [resolvable:$true] %s3516_s18 }
  0x10   : > { %s4144_s13 = scalar_select %p3501_p3, 1, 0 }
  0x11   : > { %p2982_p5 = pneg %p3501_p3  ;;  %p3126_p7 = scmp.ne.s32.totalorder %s4132_s1, %s3125_s21 }
  0x12   : > { %p3132_p11 = scmp.lt.u32.totalorder %s3125_s21, %s4132_s1 }
  0x13   : > { %p3510_p6 = pnand %p2982_p5, %p4140_p1 }
  0x15   : > { %p3526_p8 = pneg %p3510_p6 }
  0x17   : > { %p3128_p9 = pnand %p3526_p8, %p3126_p7 }
  0x19   : > { %p3129_p10 = pneg %p3128_p9 }
  0x1b   : > { %p3134_p12 = pnand %p3132_p11, %p3129_p10 }
  0x1d   : > { %3137 = shalt.err (!%p3134_p12)
}
  0x1e   : > { %s3138_s27 = scalar_lea.vmem %s3499_s11, 3072  ;;  %p3146_p5 = scmp.lt.s32.totalorder %s3499_s11, %s3499_s11 }
  0x1f   : > { %p3139_p13 = scmp.ne.s32.totalorder %s3499_s11, %s3138_s27  ;;  %p3147_p4 = scmp.lt.s32.totalorder %s3138_s27, %s3138_s27 }
  0x21   : > { %p3141_p0 = pnand %p3139_p13, %p3526_p8  ;;  %p3148_p7 = por %p3147_p4, %p3146_p5 }
  0x23   : > { %p3142_p2 = pneg %p3141_p0 }
  0x25   : > { %p3149_p9 = pnand %p3148_p7, %p3142_p2 }
  0x27   : > { %3152 = shalt.err (!%p3149_p9)
}
  0x28   : > { %s3406_s28 = smov 384   ;;  %s3407_s7 = smov 24  }
  0x29   : > { %2985 = dma.hbm_to_vmem [thread:$0]  (!%p3510_p6), %s4132_s1, 3072, %s3499_s11, [#allocation7], %s3406_s28, %s3406_s28, %s3407_s7  }
  0x2a   : > { %s3153_s21 = scalar_lea.hbm %s4134_s3, 256 }
  0x2b   : > { %p3154_p4 = scmp.ne.s32.totalorder %s4134_s3, %s3153_s21  ;;  %p3160_p12 = scmp.lt.u32.totalorder %s3153_s21, %s4134_s3 }
  0x2d   : > { %p3156_p10 = pnand %p3154_p4, %p3526_p8 }
  0x2f   : > { %p3157_p11 = pneg %p3156_p10 }
  0x31   : > { %p3162_p13 = pnand %p3160_p12, %p3157_p11 }
  0x33   : > { %3165 = shalt.err (!%p3162_p13)
}
  0x34   : > { %s3166_s11 = scalar_lea.vmem %s3514_s16, 256  ;;  %p3174_p7 = scmp.lt.s32.totalorder %s3514_s16, %s3514_s16 }
  0x35   : > { %p3167_p0 = scmp.ne.s32.totalorder %s3514_s16, %s3166_s11  ;;  %p3175_p9 = scmp.lt.s32.totalorder %s3166_s11, %s3166_s11 }
  0x37   : > { %p3169_p2 = pnand %p3167_p0, %p3526_p8  ;;  %p3176_p4 = por %p3175_p9, %p3174_p7 }
  0x39   : > { %p3170_p5 = pneg %p3169_p2 }
  0x3b   : > { %p3177_p10 = pnand %p3176_p4, %p3170_p5 }
  0x3d   : > { %3180 = shalt.err (!%p3177_p10)
}
  0x3e   : > { %s4142_s27 = smov 128   ;;  %s3409_s28 = smov 8  }
  0x3f   : > { %2991 = dma.hbm_to_vmem [thread:$0]  (!%p3510_p6), %s4134_s3, 256, %s3514_s16, [#allocation10], %s4142_s27, %s4142_s27, %s3409_s28  }
  0x40   : > { %s3181_s20 = scalar_lea.hbm %s4136_s5, 16 }
  0x41   : > { %p3182_p11 = scmp.ne.s32.totalorder %s4136_s5, %s3181_s20  ;;  %p3188_p0 = scmp.lt.u32.totalorder %s3181_s20, %s4136_s5 }
  0x43   : > { %p3184_p12 = pnand %p3182_p11, %p3526_p8 }
  0x45   : > { %p3185_p13 = pneg %p3184_p12 }
  0x47   : > { %p3190_p2 = pnand %p3188_p0, %p3185_p13 }
  0x49   : > { %3193 = shalt.err (!%p3190_p2)
}
  0x4a   : > { %s3194_s26 = scalar_lea.vmem %s296_s18, 16  ;;  %s3201_s16 = scalar_lea.vmem %s296_s18, 32 }
  0x4b   : > { %p3195_p5 = scmp.ne.s32.totalorder %s296_s18, %s3194_s26  ;;  %p3202_p4 = scmp.lt.s32.totalorder %s296_s18, %s296_s18 }
  0x4c   : > { %p3203_p10 = scmp.lt.s32.totalorder %s3201_s16, %s3194_s26 }
  0x4d   : > { %p3197_p7 = pnand %p3195_p5, %p3526_p8 }
  0x4e   : > { %p3204_p1 = por %p3203_p10, %p3202_p4 }
  0x4f   : > { %p3198_p9 = pneg %p3197_p7 }
  0x51   : > { %p3205_p3 = pnand %p3204_p1, %p3198_p9 }
  0x53   : > { %3208 = shalt.err (!%p3205_p3)
}
  0x54   : > { %2997 = dma.hbm_to_vmem [thread:$0]  (!%p3510_p6), %s4136_s5, 16, %s296_s18, [#allocation13]  }
  0x55   : > { %s3410_s15 = smov [#allocation8]   ;;  %s3411_s19 = smov [#allocation11]  }
  0x56   : > { %s257_s17 = sshll.u32 %s3410_s15, 4  ;;  %s284_s20 = sshll.u32 %s3411_s19, 4  ;;  %s258_s17 = int_to_ptr.vmem [resolvable:$true] %s257_s17  ;;  %s285_s20 = int_to_ptr.vmem [resolvable:$true] %s284_s20 }
  0x57   : > { %s3209_s23 = scalar_lea.hbm %s4133_s2, 256 }
  0x58   : > { %p3210_p1 = scmp.ne.s32.totalorder %s4133_s2, %s3209_s23  ;;  %p3216_p12 = scmp.lt.u32.totalorder %s3209_s23, %s4133_s2 }
  0x5a   : > { %p3212_p3 = pnand %p3210_p1, %p3526_p8 }
  0x5c   : > { %p3213_p11 = pneg %p3212_p3 }
  0x5e   : > { %p3218_p13 = pnand %p3216_p12, %p3213_p11 }
  0x60   : > { %3221 = shalt.err (!%p3218_p13)
}
  0x61   : > { %s3222_s18 = scalar_lea.vmem %s258_s17, 256  ;;  %p3230_p7 = scmp.lt.s32.totalorder %s258_s17, %s258_s17 }
  0x62   : > { %p3223_p0 = scmp.ne.s32.totalorder %s258_s17, %s3222_s18  ;;  %p3231_p9 = scmp.lt.s32.totalorder %s3222_s18, %s3222_s18 }
  0x64   : > { %p3225_p2 = pnand %p3223_p0, %p3526_p8  ;;  %p3232_p4 = por %p3231_p9, %p3230_p7 }
  0x66   : > { %p3226_p5 = pneg %p3225_p2 }
  0x68   : > { %p3233_p10 = pnand %p3232_p4, %p3226_p5 }
  0x6a   : > { %3236 = shalt.err (!%p3233_p10)
}
  0x6b   : > { %2988 = dma.hbm_to_vmem [thread:$0]  (!%p3510_p6), %s4133_s2, 256, %s258_s17, [#allocation7], %s4142_s27, %s4142_s27, %s3409_s28  }
  0x6c   : > { %s3237_s22 = scalar_lea.hbm %s4135_s4, 16 }
  0x6d   : > { %p3238_p1 = scmp.ne.s32.totalorder %s4135_s4, %s3237_s22  ;;  %p3244_p12 = scmp.lt.u32.totalorder %s3237_s22, %s4135_s4 }
  0x6f   : > { %p3240_p3 = pnand %p3238_p1, %p3526_p8 }
  0x71   : > { %p3241_p11 = pneg %p3240_p3 }
  0x73   : > { %p3246_p13 = pnand %p3244_p12, %p3241_p11 }
  0x75   : > { %3249 = shalt.err (!%p3246_p13)
}
  0x76   : > { %s3250_s11 = scalar_lea.vmem %s285_s20, 16  ;;  %s3257_s17 = scalar_lea.vmem %s285_s20, 32 }
  0x77   : > { %p3251_p0 = scmp.ne.s32.totalorder %s285_s20, %s3250_s11  ;;  %p3258_p7 = scmp.lt.s32.totalorder %s285_s20, %s285_s20 }
  0x78   : > { %p3259_p9 = scmp.lt.s32.totalorder %s3257_s17, %s3250_s11 }
  0x79   : > { %p3253_p2 = pnand %p3251_p0, %p3526_p8 }
  0x7a   : > { %p3260_p4 = por %p3259_p9, %p3258_p7 }
  0x7b   : > { %p3254_p5 = pneg %p3253_p2 }
  0x7d   : > { %p3261_p10 = pnand %p3260_p4, %p3254_p5 }
  0x7f   : > { %3264 = shalt.err (!%p3261_p10)
}
  0x80   : > { %2994 = dma.hbm_to_vmem [thread:$0]  (!%p3510_p6), %s4135_s4, 16, %s285_s20, [#allocation10]  }
  0x81   : > { %s3412_s15 = smov [#allocation14]   ;;  %s3265_s23 = scalar_lea.hbm %s4137_s6, 16 }
  0x82   : > { %s306_s19 = sshll.u32 %s3412_s15, 4  ;;  %p3266_p1 = scmp.ne.s32.totalorder %s4137_s6, %s3265_s23  ;;  %s307_s19 = int_to_ptr.vmem [resolvable:$true] %s306_s19 }
  0x83   : > { %p3272_p12 = scmp.lt.u32.totalorder %s3265_s23, %s4137_s6 }
  0x84   : > { %p3268_p3 = pnand %p3266_p1, %p3526_p8 }
  0x86   : > { %p3269_p11 = pneg %p3268_p3 }
  0x88   : > { %p3274_p13 = pnand %p3272_p12, %p3269_p11 }
  0x8a   : > { %3277 = shalt.err (!%p3274_p13)
}
  0x8b   : > { %s3278_s20 = scalar_lea.vmem %s307_s19, 16  ;;  %s3285_s17 = scalar_lea.vmem %s307_s19, 32 }
  0x8c   : > { %p3279_p0 = scmp.ne.s32.totalorder %s307_s19, %s3278_s20  ;;  %p3286_p7 = scmp.lt.s32.totalorder %s307_s19, %s307_s19 }
  0x8d   : > { %p3287_p9 = scmp.lt.s32.totalorder %s3285_s17, %s3278_s20 }
  0x8e   : > { %p3281_p2 = pnand %p3279_p0, %p3526_p8 }
  0x8f   : > { %p3288_p4 = por %p3287_p9, %p3286_p7 }
  0x90   : > { %p3282_p5 = pneg %p3281_p2 }
  0x92   : > { %p3289_p10 = pnand %p3288_p4, %p3282_p5 }
  0x94   : > { %3292 = shalt.err (!%p3289_p10)
}
  0x95   : > { %3000 = dma.hbm_to_vmem [thread:$0]  (!%p3510_p6), %s4137_s6, 16, %s307_s19, [#allocation13]  }
  0x96   : > { %s2690_s24 = sadd.s32 4294967294, %s3401_s10   ;;  %s3651_s14 = sadd.s32 1, %s3401_s10  }
  0x97   : > { %s32_s15 = ssub.s32 %s3401_s10, %s3651_s14  ;;  %s35_s21 = sadd.s32 1, %s3397_s9 }
  0x98   : > { %p33_p8 = scmp.eq.s32.totalorder %s32_s15, 0  ;;  %p42_p1 = scmp.ne.s32.totalorder %s3397_s9, %s3393_s30 }
  0x99   : > { %p43_p3 = scmp.eq.s32.totalorder %s3401_s10, 0  ;;  %p48_p11 = scmp.ne.s32.totalorder %s3393_s30, %s3389_s29 }
  0x9a   : > { %s3662_s22 = scalar_select %p33_p8, %s3397_s9, %s35_s21  }
  0x9b   : > { %p3664_p12 = por %p43_p3, %p42_p1  ;;  %p4148_p13 = scmp.eq.s32.totalorder %s3494_s12, 0 }
  0x9c   : > { %p219_p0 = scmp.eq.s32.totalorder %s3494_s12, 1  ;;  %p225_p2 = scmp.eq.s32.totalorder %s2690_s24, 1 }
  0x9d   : > { %p3670_p6 = por %p4148_p13, %p48_p11  ;;  %p3015_p5 = scmp.lt.s32.totalorder %s3401_s10, 2 }
  0x9e   : > { %s320_s25 = sand.u32 1, %s3397_s9   ;;  %p3677_p7 = por %p219_p0, %p42_p1 }
  0x9f   : > { %p3681_p9 = por %p225_p2, %p48_p11  ;;  %s2699_s11 = sshll.u32 %s320_s25, 4 }
  0xa0   : > { %s4150_s26 = scalar_select %p3677_p7, 1, 0 }
  0xa1   : > { %s4151_s16 = scalar_select %p3681_p9, 1, 0 }
  0xa2   : > { %s2763_s20 = sshll.u32 %s3401_s10, 8  ;;  %s324_s24 = scalar_lea.vmem [#allocation3], %s2699_s11 }
  0xa3   : > { %s3689_s7 = scalar_lea.hbm %s4131_s0, %s2763_s20  ;;  %s331_s15 = sshll.u32 %s324_s24, 4  ;;  %s3691_s15 = int_to_ptr.vmem [resolvable:$true] %s331_s15 }
  0xa4   : > { %p3695_p4 = pnand %p3015_p5, %p3664_p12  ;;  %s3699_s27 = scalar_lea.sflag [#allocation4], %s320_s25 }
  0xa5   : > { %s3293_s17 = scalar_lea.hbm %s3689_s7, 256  ;;  %s3298_s23 = scalar_lea.hbm %s4131_s0, 512 }
  0xa6   : > { %p3294_p10 = scmp.ne.s32.totalorder %s3689_s7, %s3293_s17  ;;  %p3295_p8 = pneg %p3695_p4 }
  0xa7   : > { %p3299_p11 = scmp.lt.u32.totalorder %s3689_s7, %s4131_s0  ;;  %p3300_p12 = scmp.lt.u32.totalorder %s3298_s23, %s3293_s17 }
  0xa8   : > { %p3296_p1 = pnand %p3295_p8, %p3294_p10  ;;  %p3302_p0 = scmp.lt.u32.totalorder %s3293_s17, %s3689_s7 }
  0xa9   : > { %p3301_p13 = por %p3300_p12, %p3299_p11 }
  0xaa   : > { %p3297_p3 = pneg %p3296_p1 }
  0xab   : > { %p3303_p2 = por %p3302_p0, %p3301_p13 }
  0xad   : > { %p3304_p5 = pnand %p3303_p2, %p3297_p3 }
  0xaf   : > { %3307 = shalt.err (!%p3304_p5)
}
  0xb0   : > { %s3308_s25 = scalar_lea.vmem %s3691_s15, 256  ;;  %s3413_s11 = smov [#allocation3]  }
  0xb1   : > { %p3309_p10 = scmp.ne.s32.totalorder %s3691_s15, %s3308_s25  ;;  %s3313_s20 = sshll.u32 %s3413_s11, 4  ;;  %s3314_s20 = int_to_ptr.vmem [resolvable:$false] %s3313_s20 }
  0xb2   : > { %s3315_s18 = scalar_lea.vmem %s3314_s20, 512  ;;  %p3316_p7 = scmp.lt.s32.totalorder %s3691_s15, %s3314_s20 }
  0xb3   : > { %p3311_p1 = pnand %p3309_p10, %p3295_p8  ;;  %p3317_p11 = scmp.lt.s32.totalorder %s3315_s18, %s3308_s25 }
  0xb5   : > { %p3312_p9 = pneg %p3311_p1  ;;  %p3318_p12 = por %p3317_p11, %p3316_p7 }
  0xb7   : > { %p3319_p13 = pnand %p3318_p12, %p3312_p9 }
  0xb9   : > { %3322 = shalt.err (!%p3319_p13)
}
  0xba   : > { %s4153_s17 = smov 128   ;;  %p4154_p8 = scmp.ne.s32.totalorder %s4144_s13, 0 }
  0xbb   : > { %3004 = dma.hbm_to_vmem [thread:$0]  (!%p3695_p4), %s3689_s7, 256, %s3691_s15, %s3699_s27, %s4153_s17, %s4153_s17, %s3409_s28  }
  0xbc   : > { %343 = sbr.rel (%p4154_p8) target bundleno = 2102 (0x836), region = 52  ;;  %s3733_s23 = sand.u32 (!%p4154_p8), 1, %s3393_s30  }
  0xbd   : > { %s2703_s24 = sshll.u32 (!%p4154_p8), %s3733_s23, 4  ;;  %s346_s25 = scalar_lea.sflag (!%p4154_p8), [#allocation4], %s3733_s23 }
  0xbe   : > { %s3739_s21 = scalar_lea.vmem (!%p4154_p8), [#allocation3], %s2703_s24 }
  0xc3   : > { %3368 = dma.done.wait (%p3670_p6), %s346_s25, 256  }
  0xc4   : > { %3370 = vsyncadd (%p3670_p6), %s346_s25, 4294967040  ;;  %p4155_p7 = scmp.eq.s32.totalorder %s3494_s12, 0 }
  0xc6   : > { %3372 = dma.done.wait (%p4155_p7), [#allocation7], 3328   ;;  %p4156_p9 = pmov %p4155_p7 }
  0xc7   : > { %p4157_p4 = pmov %p4155_p7 }
  0xc8   : > { %3374 = vsyncadd (%p4156_p9), [#allocation7], 4294963968 }
  0xc9   : > { %3376 = dma.done.wait (%p4157_p4), [#allocation10], 272   ;;  %p4158_p3 = pmov %p4157_p4 }
  0xcb   : > { %3378 = vsyncadd (%p4158_p3), [#allocation10], 4294967024  ;;  %p4159_p0 = pmov %p4158_p3 }
  0xcd   : > { %3380 = dma.done.wait (%p4159_p0), [#allocation13], 32   ;;  %p4160_p2 = pmov %p4159_p0 }
  0xce   : > { %v3758_v0 = vld [vmem:[%s3739_s21] sm:$0xff]  ;;  %vm411_vm0 = vcmask 523264   ;;  %v3761_v1 = vld [vmem:[%s3739_s21 + $0x8] sm:$0xff]  ;;  %v3414_v28 = vmov 0.0   ;;  %s3415_s13 = smov 96   ;;  %s3416_s27 = smov 112  }
  0xcf   : > { %3382 = vsyncadd (%p4160_p2), [#allocation13], 4294967264  ;;  %v409_v2 = vmul.f32 %v3758_v0, %v3758_v0  ;;  %v410_v3 = vmul.f32 %v3761_v1, %v3761_v1  ;;  %v436_v6 = vld [vmem:[#allocation6 + $0x8] sm:$0xff]  ;;  %v439_v7 = vld [vmem:[#allocation6 + $0x20] sm:$0xff]  ;;  %529 = vmatprep.mubr.f32.mxu0 %v3414_v28  ;;  %s3417_s28 = smov 80   ;;  %s3418_s19 = smov 64  }
  0xd0   : > { %v2882_v8 = vpack.c.bf16 %v439_v7, %v436_v6  ;;  %v435_v9 = vld [vmem:[#allocation6] sm:$0xff]  ;;  %v438_v10 = vld [vmem:[#allocation6 + $0x18] sm:$0xff]  ;;  %v445_v13 = vld [vmem:[#allocation6 + $0x50] sm:$0xff]  ;;  %vm1455_vm1 = vcmask 130048   ;;  %s2216_s7 = sld [smem:[#allocation2]]  ;;  %vm2231_vm3 = vcmask 261120  }
  0xd1   : > { %v412_v4 = vsel %vm411_vm0, %v409_v2, 0.0  ;;  %v415_v5 = vsel %vm411_vm0, %v410_v3, 0.0  ;;  %v2884_v11 = vpack.c.bf16 %v438_v10, %v435_v9  ;;  %v442_v12 = vld [vmem:[#allocation6 + $0x38] sm:$0xff]  ;;  %v441_v15 = vld [vmem:[#allocation6 + $0x30] sm:$0xff]  ;;  %v444_v16 = vld [vmem:[#allocation6 + $0x48] sm:$0xff]  ;;  %v652_v10 = vlaneseq  ;;  %s3421_s15 = smov 32  }
  0xd2   : > { %413 = vadd.xlane.f32.xlu0 %v412_v4  ;;  %2883 = vmatprep.subr.bf16.mxu0 %v2882_v8  ;;  %v2886_v14 = vpack.c.bf16 %v445_v13, %v442_v12  ;;  %v2888_v17 = vpack.c.bf16 %v444_v16, %v441_v15  ;;  %v437_v18 = vld [vmem:[#allocation6 + $0x10] sm:$0xff]  ;;  %v440_v19 = vld [vmem:[#allocation6 + $0x28] sm:$0xff]  ;;  %v451_v22 = vld [vmem:[#allocation6 + $0x80] sm:$0xff]  ;;  %v3419_v8 = vmov 1983009808   ;;  %s2764_s11 = sshll.u32 %s3494_s12, 8 }
  0xd3   : > { %2885 = vmatpush1.bf16.msra.mxu0 %v2884_v11  ;;  %v2898_v20 = vpack.c.bf16 %v440_v19, %v437_v18  ;;  %v448_v21 = vld [vmem:[#allocation6 + $0x68] sm:$0xff]  ;;  %v447_v23 = vld [vmem:[#allocation6 + $0x60] sm:$0xff]  ;;  %v450_v25 = vld [vmem:[#allocation6 + $0x78] sm:$0xff]  ;;  %v650_v9 = vunpack.c.l.s4 %v3419_v8  ;;  %v3420_v11 = vmov 1934713408   ;;  %v653_v16 = vshrl.u32 %v652_v10, 7 }
  0xd4   : > { %2887 = vmatprep.subr.bf16.mxu0 %v2886_v14  ;;  %v2890_v24 = vpack.c.bf16 %v451_v22, %v448_v21  ;;  %v443_v26 = vld [vmem:[#allocation6 + $0x40] sm:$0xff]  ;;  %v446_v27 = vld [vmem:[#allocation6 + $0x58] sm:$0xff]  ;;  %v2892_v29 = vpack.c.bf16 %v450_v25, %v447_v23  ;;  %v457_v32 = vld [vmem:[#allocation6 + $0xb0] sm:$0xff]  ;;  %v682_v12 = vunpack.c.l.s4 %v3420_v11  ;;  %s405_s20 = scalar_lea.vmem [#allocation15], %s2703_s24  ;;  %s2547_s12 = scalar_lea.sflag [#allocation5], %s3733_s23 }
  0xd5   : > { %2899 = vmatprep.subr.bf16.mxu1 %v2898_v20  ;;  %v2902_v30 = vpack.c.bf16 %v446_v27, %v443_v26  ;;  %v454_v31 = vld [vmem:[#allocation6 + $0x98] sm:$0xff]  ;;  %v453_v33 = vld [vmem:[#allocation6 + $0x90] sm:$0xff]  ;;  %v456_v35 = vld [vmem:[#allocation6 + $0xa8] sm:$0xff]  ;;  %v651_v15 = vunpack.c.0.s8 %v650_v9  ;;  %s2560_s18 = sshll.u32 %s405_s20, 4  ;;  %p4163_p5 = scmp.ne.s32.totalorder %s4150_s26, 0  ;;  %s4085_s18 = int_to_ptr.vmem [resolvable:$true] %s2560_s18 }
  0xd6   : > { %416 = vadd.xlane.f32.xlu0 %v415_v5  ;;  %2901 = vmatpush3.bf16.msra.mxu1 %v2898_v20  ;;  %v2894_v34 = vpack.c.bf16 %v457_v32, %v454_v31  ;;  %v449_v36 = vld [vmem:[#allocation6 + $0x70] sm:$0xff]  ;;  %v452_v37 = vld [vmem:[#allocation6 + $0x88] sm:$0xff]  ;;  %v2896_v38 = vpack.c.bf16 %v456_v35, %v453_v33  ;;  %v455_v40 = vld [vmem:[#allocation6 + $0xa0] sm:$0xff]  ;;  %s3323_s24 = scalar_lea.vmem %s4085_s18, 256 }
  0xd7   : > { %2889 = vmatpush1.bf16.msra.mxu0 %v2888_v17  ;;  %2903 = vmatprep.subr.bf16.mxu1 %v2902_v30  ;;  %v2906_v39 = vpack.c.bf16 %v452_v37, %v449_v36  ;;  %v458_v41 = vld [vmem:[#allocation6 + $0xb8] sm:$0xff]  ;;  %v2711_v50 = vld [vmem:[#allocation11] ss:$0 sm:$0xff]  ;;  %v621_v57 = vld [vmem:[#allocation9] sm:$0xff]  ;;  %v683_v17 = vunpack.c.0.s8 %v682_v12  ;;  %v3792_v21 = vsub.s32 %v651_v15, %v653_v16  ;;  %p3324_p6 = scmp.ne.s32.totalorder %s4085_s18, %s3323_s24 }
  0xd8   : > { %2891 = vmatprep.subr.bf16.mxu0 %v2890_v24  ;;  %v2910_v42 = vpack.c.bf16 %v458_v41, %v455_v40  ;;  %v617_v56 = vld [vmem:[#allocation8] sm:$0xff]  ;;  %v618_v62 = vld [vmem:[#allocation8 + $0x8] sm:$0xff]  ;;  %v622_v63 = vld [vmem:[#allocation9 + $0x8] sm:$0xff] }
  0xd9   : > { %v3795_v24 = vsub.s32 %v683_v17, %v653_v16  ;;  %vm3895_vm2 = vmpackc.low %vm1455_vm1, %vm1455_vm1  ;;  %p3325_p10 = pnand %p3324_p6, %p4163_p5 }
  0xda   : > { %2905 = vmatpush3.bf16.msra.mxu1 %v2902_v30 }
  0xdb   : > { %2893 = vmatpush1.bf16.msra.mxu0 %v2892_v29  ;;  %2907 = vmatprep.subr.bf16.mxu1 %v2906_v39  ;;  %p3326_p1 = pneg %p3325_p10 }
  0xdc   : > { %2895 = vmatprep.subr.bf16.mxu0 %v2894_v34 }
  0xde   : > { %2909 = vmatpush3.bf16.msra.mxu1 %v2906_v39 }
  0xdf   : > { %2897 = vmatpush1.bf16.msra.mxu0 %v2896_v38  ;;  %2911 = vmatprep.subr.bf16.mxu1 %v2910_v42 }
  0xe2   : > { %2913 = vmatpush3.bf16.msra.mxu1 %v2910_v42 }
 0x15f   : > { %v414_v43 = vpop.xlane.xlu0 %413 }
 0x160   : > { %v419_v44 = vmul.f32 0.015625, %v414_v43 }
 0x162   : > { %v421_v45 = vadd.f32 1e-05, %v419_v44 }
 0x163   : > { %v417_v46 = vpop.xlane.xlu0 %416 }
 0x164   : > { %3075 = vrsqrt.f32 %v421_v45  ;;  %v420_v47 = vmul.f32 0.015625, %v417_v46 }
 0x166   : > { %v422_v48 = vadd.f32 1e-05, %v420_v47 }
 0x168   : > { %3077 = vrsqrt.f32 %v422_v48 }
 0x16e   : > { %v3076_v49 = vpop.eup %3075 }
 0x16f   : > { %v425_v51 = vmul.f32 %v3076_v49, %v3758_v0 }
 0x171   : > { %v433_v52 = vmul.f32 %v2711_v50, %v425_v51 }
 0x172   : > { %v3078_v53 = vpop.eup %3077 }
 0x173   : > { %2712 = vmatmul.mubr.msk.f32.vlgmr.msra.gmra.mrb[0].mxu0 %vm411_vm0, %v433_v52  ;;  %2823 = vmatprep.mubr.msk.f32.mxu1 %vm411_vm0, %v433_v52  ;;  %v426_v54 = vmul.f32 %v3078_v53, %v3761_v1 }
 0x174   : > { %535 = vmatprep.mubr.f32.mxu0 %v3414_v28 }
 0x175   : > { %v434_v55 = vmul.f32 %v2711_v50, %v426_v54 }
 0x177   : > { %2713 = vmatmul.mubr.msk.f32.gmra.mrb[2].mxu0 %vm411_vm0, %v434_v55  ;;  %2824 = vmatmul.mubr.msk.f32.vlgmr.msra.gmra.mrb[0].mxu1 %vm411_vm0, %v434_v55 }
 0x246   : > { %v531_v58 = vpop.f32.mrb[0].mxu0 }
 0x247   : > { %v619_v59 = vmul.f32 %v617_v56, %v531_v58  ;;  %v533_v60 = vpop.f32.mrb[1].mxu0 }
 0x248   : > { %v623_v61 = vmul.f32 %v621_v57, %v533_v60 }
 0x24a   : > { %v625_v0 = vadd.f32 %v623_v61, %v619_v59  ;;  %v537_v2 = vpop.f32.mrb[2].mxu0  ;;  %v3777_v3 = vpop.f32.mrb[0].mxu1 }
 0x24b   : > { %v620_v1 = vmul.f32 %v618_v62, %v537_v2  ;;  %v539_v4 = vpop.f32.mrb[3].mxu0  ;;  %v3779_v5 = vpop.f32.mrb[1].mxu1 }
 0x24c   : > { %635 = vrot.lane.b32.xlu0 %v625_v0, %s3415_s13  ;;  %629 = vrot.lane.b32.xlu1 %v625_v0, %s3416_s27  ;;  %v624_v6 = vmul.f32 %v622_v63, %v539_v4 }
 0x24e   : > { %v3782_v7 = vadd.f32 %v624_v6, %v620_v1 }
 0x250   : > { %641 = vrot.lane.b32.xlu1 %v625_v0, %s3417_s28 }
 0x254   : > { %631 = vrot.lane.b32.xlu1 %v3782_v7, %s3416_s27 }
 0x258   : > { %637 = vrot.lane.b32.xlu1 %v3782_v7, %s3415_s13 }
 0x25c   : > { %643 = vrot.lane.b32.xlu1 %v3782_v7, %s3417_s28 }
 0x260   : > { %919 = vrot.lane.b32.xlu1 %v625_v0, %s3418_s19 }
 0x264   : > { %921 = vrot.lane.b32.xlu1 %v3782_v7, %s3418_s19 }
 0x2be   : > { %v630_v13 = vpop.permute.xlu1 %629  ;;  %v636_v14 = vpop.permute.xlu0 %635 }
 0x2bf   : > { %923 = vrot.lane.b32.xlu1 %v630_v13, %s3418_s19  ;;  %v647_v18 = vcombine.low %v625_v0, %v636_v14  ;;  %v648_v19 = vcombine.high %v625_v0, %v636_v14 }
 0x2c1   : > { %v655_v25 = vrot.slane %v647_v18, %v3792_v21  ;;  %v662_v26 = vrot.slane %v648_v19, %v3792_v21 }
 0x2c2   : > { %v642_v20 = vpop.permute.xlu1 %641 }
 0x2c3   : > { %v663_v22 = vcombine.low %v630_v13, %v642_v20  ;;  %v664_v23 = vcombine.high %v630_v13, %v642_v20  ;;  %927 = vrot.lane.b32.xlu1 %v636_v14, %s3418_s19 }
 0x2c5   : > { %v671_v27 = vrot.slane %v663_v22, %v3792_v21  ;;  %v678_v29 = vrot.slane %v664_v23, %v3792_v21 }
 0x2c6   : > { %v632_v30 = vpop.permute.xlu1 %631 }
 0x2c7   : > { %v679_v31 = vcombine.low %v655_v25, %v671_v27  ;;  %v680_v32 = vcombine.high %v655_v25, %v671_v27  ;;  %v695_v33 = vcombine.low %v662_v26, %v678_v29  ;;  %v696_v34 = vcombine.high %v662_v26, %v678_v29  ;;  %925 = vrot.lane.b32.xlu0 %v632_v30, %s3418_s19 }
 0x2c8   : > { %931 = vrot.lane.b32.xlu1 %v642_v20, %s3418_s19 }
 0x2c9   : > { %v687_v35 = vrot.slane %v679_v31, %v3795_v24  ;;  %v694_v36 = vrot.slane %v680_v32, %v3795_v24  ;;  %v703_v37 = vrot.slane %v695_v33, %v3795_v24  ;;  %v710_v38 = vrot.slane %v696_v34, %v3795_v24 }
 0x2ca   : > { %v638_v39 = vpop.permute.xlu1 %637 }
 0x2cb   : > { %v783_v40 = vcombine.low %v687_v35, %v694_v36  ;;  %v2716_v41 = vcombine.high %v687_v35, %v694_v36  ;;  %v799_v42 = vcombine.low %v703_v37, %v710_v38  ;;  %v2717_v43 = vcombine.high %v703_v37, %v710_v38  ;;  %929 = vrot.lane.b32.xlu0 %v638_v39, %s3418_s19 }
 0x2cc   : > { %v715_v44 = vcombine.low %v3782_v7, %v638_v39  ;;  %v716_v45 = vcombine.high %v3782_v7, %v638_v39 }
 0x2cd   : > { %v790_v46 = vrot.slane %v783_v40, %v3792_v21  ;;  %v798_v47 = vrot.slane %v2716_v41, %v3792_v21  ;;  %v806_v48 = vrot.slane %v799_v42, %v3792_v21  ;;  %v814_v49 = vrot.slane %v2717_v43, %v3792_v21 }
 0x2ce   : > { %v644_v50 = vpop.permute.xlu1 %643  ;;  %v723_v55 = vrot.slane %v715_v44, %v3792_v21  ;;  %v730_v56 = vrot.slane %v716_v45, %v3792_v21 }
 0x2cf   : > { %v731_v51 = vcombine.low %v632_v30, %v644_v50  ;;  %v732_v52 = vcombine.high %v632_v30, %v644_v50  ;;  %933 = vrot.lane.b32.xlu0 %v644_v50, %s3418_s19  ;;  %v815_v53 = vcombine.low %v790_v46, %v798_v47  ;;  %v831_v54 = vcombine.low %v806_v48, %v814_v49 }
 0x2d0   : > { %v816_v57 = vcombine.high %v790_v46, %v798_v47  ;;  %v832_v58 = vcombine.high %v806_v48, %v814_v49 }
 0x2d1   : > { %v739_v59 = vrot.slane %v731_v51, %v3792_v21  ;;  %v746_v60 = vrot.slane %v732_v52, %v3792_v21  ;;  %v823_v61 = vrot.slane %v815_v53, %v3795_v24  ;;  %v839_v62 = vrot.slane %v831_v54, %v3795_v24 }
 0x2d2   : > { %v3822_v63 = vrot.slane %v816_v57, %v3795_v24  ;;  %v3825_v0 = vrot.slane %v832_v58, %v3795_v24  ;;  %v920_v38 = vpop.permute.xlu1 %919 }
 0x2d3   : > { %v747_v2 = vcombine.low %v723_v55, %v739_v59  ;;  %v748_v1 = vcombine.high %v723_v55, %v739_v59  ;;  %v763_v4 = vcombine.low %v730_v56, %v746_v60  ;;  %v764_v6 = vcombine.high %v730_v56, %v746_v60 }
 0x2d4   : > { %v847_v7 = vcombine.low %v823_v61, %v839_v62  ;;  %v848_v8 = vcombine.high %v823_v61, %v839_v62  ;;  %v849_v9 = vcombine.low %v3822_v63, %v3825_v0  ;;  %v850_v10 = vcombine.high %v3822_v63, %v3825_v0 }
 0x2d5   : > { %v755_v11 = vrot.slane %v747_v2, %v3795_v24  ;;  %v762_v12 = vrot.slane %v748_v1, %v3795_v24  ;;  %v771_v13 = vrot.slane %v763_v4, %v3795_v24  ;;  %v778_v14 = vrot.slane %v764_v6, %v3795_v24 }
 0x2d6   : > { %2830 = vmatprep.mubr.msk.f32.mxu0 %vm1455_vm1, %v847_v7  ;;  %2837 = vmatprep.mubr.msk.f32.mxu1 %vm1455_vm1, %v848_v8  ;;  %v922_v39 = vpop.permute.xlu1 %921 }
 0x2d7   : > { %v851_v15 = vcombine.low %v755_v11, %v762_v12  ;;  %v2718_v16 = vcombine.high %v755_v11, %v762_v12  ;;  %v867_v17 = vcombine.low %v771_v13, %v778_v14  ;;  %v2719_v18 = vcombine.high %v771_v13, %v778_v14 }
 0x2d9   : > { %v858_v19 = vrot.slane %v851_v15, %v3792_v21  ;;  %v866_v20 = vrot.slane %v2718_v16, %v3792_v21  ;;  %v874_v22 = vrot.slane %v867_v17, %v3792_v21  ;;  %v882_v23 = vrot.slane %v2719_v18, %v3792_v21 }
 0x2db   : > { %v883_v25 = vcombine.low %v858_v19, %v866_v20  ;;  %v884_v26 = vcombine.high %v858_v19, %v866_v20  ;;  %v899_v27 = vcombine.low %v874_v22, %v882_v23  ;;  %v900_v29 = vcombine.high %v874_v22, %v882_v23 }
 0x2dd   : > { %v3842_v30 = vrot.slane %v883_v25, %v3795_v24  ;;  %v3845_v31 = vrot.slane %v899_v27, %v3795_v24  ;;  %v3848_v32 = vrot.slane %v884_v26, %v3795_v24  ;;  %v3851_v33 = vrot.slane %v900_v29, %v3795_v24 }
 0x2df   : > { %v915_v34 = vcombine.low %v3842_v30, %v3845_v31  ;;  %v916_v35 = vcombine.high %v3842_v30, %v3845_v31  ;;  %v917_v36 = vcombine.low %v3848_v32, %v3851_v33  ;;  %v918_v37 = vcombine.high %v3848_v32, %v3851_v33 }
 0x331   : > { %v924_v40 = vpop.permute.xlu1 %923 }
 0x335   : > { %v928_v41 = vpop.permute.xlu1 %927 }
 0x336   : > { %v943_v42 = vcombine.low %v920_v38, %v928_v41  ;;  %v944_v43 = vcombine.high %v920_v38, %v928_v41 }
 0x338   : > { %v951_v48 = vrot.slane %v943_v42, %v3792_v21  ;;  %v958_v49 = vrot.slane %v944_v43, %v3792_v21 }
 0x339   : > { %v926_v44 = vpop.permute.xlu0 %925 }
 0x33a   : > { %v932_v45 = vpop.permute.xlu1 %931 }
 0x33b   : > { %v959_v46 = vcombine.low %v924_v40, %v932_v45  ;;  %v960_v47 = vcombine.high %v924_v40, %v932_v45 }
 0x33d   : > { %v967_v50 = vrot.slane %v959_v46, %v3792_v21  ;;  %v974_v51 = vrot.slane %v960_v47, %v3792_v21  ;;  %v930_v52 = vpop.permute.xlu0 %929 }
 0x33e   : > { %v1011_v57 = vcombine.low %v922_v39, %v930_v52  ;;  %v1012_v58 = vcombine.high %v922_v39, %v930_v52 }
 0x33f   : > { %v975_v53 = vcombine.low %v951_v48, %v967_v50  ;;  %v976_v54 = vcombine.high %v951_v48, %v967_v50  ;;  %v991_v55 = vcombine.low %v958_v49, %v974_v51  ;;  %v992_v56 = vcombine.high %v958_v49, %v974_v51 }
 0x340   : > { %v1019_v12 = vrot.slane %v1011_v57, %v3792_v21  ;;  %v1026_v13 = vrot.slane %v1012_v58, %v3792_v21 }
 0x341   : > { %v983_v59 = vrot.slane %v975_v53, %v3795_v24  ;;  %v990_v60 = vrot.slane %v976_v54, %v3795_v24  ;;  %v999_v61 = vrot.slane %v991_v55, %v3795_v24  ;;  %v1006_v62 = vrot.slane %v992_v56, %v3795_v24  ;;  %v934_v2 = vpop.permute.xlu0 %933 }
 0x342   : > { %v1027_v1 = vcombine.low %v926_v44, %v934_v2  ;;  %v1028_v4 = vcombine.high %v926_v44, %v934_v2 }
 0x343   : > { %v1079_v6 = vcombine.low %v983_v59, %v990_v60  ;;  %v2720_v7 = vcombine.high %v983_v59, %v990_v60  ;;  %v1095_v8 = vcombine.low %v999_v61, %v1006_v62  ;;  %v2721_v11 = vcombine.high %v999_v61, %v1006_v62 }
 0x344   : > { %v1035_v14 = vrot.slane %v1027_v1, %v3792_v21  ;;  %v1042_v15 = vrot.slane %v1028_v4, %v3792_v21 }
 0x345   : > { %v1086_v16 = vrot.slane %v1079_v6, %v3792_v21  ;;  %v1094_v17 = vrot.slane %v2720_v7, %v3792_v21  ;;  %v1102_v18 = vrot.slane %v1095_v8, %v3792_v21  ;;  %v1110_v19 = vrot.slane %v2721_v11, %v3792_v21 }
 0x346   : > { %v1043_v20 = vcombine.low %v1019_v12, %v1035_v14  ;;  %v1044_v22 = vcombine.high %v1019_v12, %v1035_v14  ;;  %v1059_v23 = vcombine.low %v1026_v13, %v1042_v15  ;;  %v1060_v25 = vcombine.high %v1026_v13, %v1042_v15 }
 0x347   : > { %v1111_v39 = vcombine.low %v1086_v16, %v1094_v17  ;;  %v1127_v40 = vcombine.low %v1102_v18, %v1110_v19  ;;  %v1112_v45 = vcombine.high %v1086_v16, %v1094_v17  ;;  %v1128_v46 = vcombine.high %v1102_v18, %v1110_v19 }
 0x348   : > { %v1051_v26 = vrot.slane %v1043_v20, %v3795_v24  ;;  %v1058_v27 = vrot.slane %v1044_v22, %v3795_v24  ;;  %v1067_v29 = vrot.slane %v1059_v23, %v3795_v24  ;;  %v1074_v38 = vrot.slane %v1060_v25, %v3795_v24 }
 0x349   : > { %v1119_v51 = vrot.slane %v1111_v39, %v3795_v24  ;;  %v1135_v52 = vrot.slane %v1127_v40, %v3795_v24  ;;  %v1126_v57 = vrot.slane %v1112_v45, %v3795_v24  ;;  %v1142_v58 = vrot.slane %v1128_v46, %v3795_v24 }
 0x34a   : > { %v1147_v41 = vcombine.low %v1051_v26, %v1058_v27  ;;  %v2722_v42 = vcombine.high %v1051_v26, %v1058_v27  ;;  %v1163_v43 = vcombine.low %v1067_v29, %v1074_v38  ;;  %v2723_v44 = vcombine.high %v1067_v29, %v1074_v38 }
 0x34b   : > { %v1143_v2 = vcombine.low %v1119_v51, %v1135_v52  ;;  %v1144_v1 = vcombine.high %v1119_v51, %v1135_v52  ;;  %v1145_v14 = vcombine.low %v1126_v57, %v1142_v58  ;;  %v1146_v15 = vcombine.high %v1126_v57, %v1142_v58 }
 0x34c   : > { %v1154_v47 = vrot.slane %v1147_v41, %v3792_v21  ;;  %v1162_v48 = vrot.slane %v2722_v42, %v3792_v21  ;;  %v1170_v49 = vrot.slane %v1163_v43, %v3792_v21  ;;  %v1178_v50 = vrot.slane %v2723_v44, %v3792_v21 }
 0x34e   : > { %v1179_v53 = vcombine.low %v1154_v47, %v1162_v48  ;;  %v1195_v54 = vcombine.low %v1170_v49, %v1178_v50  ;;  %v1180_v55 = vcombine.high %v1154_v47, %v1162_v48  ;;  %v1196_v56 = vcombine.high %v1170_v49, %v1178_v50 }
 0x34f   : > { %v1289_v50 = vcombine.high %v3777_v3, %v3414_v28 }
 0x350   : > { %v1187_v59 = vrot.slane %v1179_v53, %v3795_v24  ;;  %v1203_v60 = vrot.slane %v1195_v54, %v3795_v24  ;;  %v1194_v61 = vrot.slane %v1180_v55, %v3795_v24  ;;  %v1210_v62 = vrot.slane %v1196_v56, %v3795_v24 }
 0x351   : > { %v1223_v53 = vcombine.high %v3779_v5, %v3414_v28 }
 0x352   : > { %v1211_v4 = vcombine.low %v1187_v59, %v1203_v60  ;;  %v1212_v6 = vcombine.high %v1187_v59, %v1203_v60  ;;  %v1213_v7 = vcombine.low %v1194_v61, %v1210_v62  ;;  %v1214_v8 = vcombine.high %v1194_v61, %v1210_v62 }
 0x353   : > { %v1296_v61 = vrot.slane %v3777_v3, %v3792_v21  ;;  %v1303_v62 = vrot.slane %v1289_v50, %v3792_v21 }
 0x354   : > { %v2914_v12 = vpack.c.bf16 %v1211_v4, %v1143_v2  ;;  %v2920_v13 = vpack.c.bf16 %v1212_v6, %v1144_v1  ;;  %v2926_v16 = vpack.c.bf16 %v1213_v7, %v1145_v14  ;;  %v2932_v17 = vpack.c.bf16 %v1214_v8, %v1146_v15 }
 0x355   : > { %v1230_v2 = vrot.slane %v3779_v5, %v3792_v21  ;;  %v1237_v6 = vrot.slane %v1223_v53, %v3792_v21 }
 0x356   : > { %2916 = vmatprep.subr.msk.bf16.mxu0 %vm3895_vm2, %v2914_v12  ;;  %2922 = vmatprep.subr.msk.bf16.mxu1 %vm3895_vm2, %v2920_v13 }
 0x357   : > { %2919 = vmatpush3.bf16.xpose.msk.msra.mxu0 %vm3895_vm2, %v2914_v12  ;;  %2925 = vmatpush3.bf16.xpose.msk.msra.mxu1 %vm3895_vm2, %v2920_v13 }
 0x358   : > { %2928 = vmatprep.subr.msk.bf16.mxu0 %vm3895_vm2, %v2926_v16  ;;  %2934 = vmatprep.subr.msk.bf16.mxu1 %vm3895_vm2, %v2932_v17 }
 0x35e   : > { %2831 = vmatmul.mubr.msk.f32.vlgmr.msra.gmra.mrb[4].mxu0 %vm1455_vm1, %v915_v34  ;;  %2838 = vmatmul.mubr.msk.f32.vlgmr.msra.gmra.mrb[2].mxu1 %vm1455_vm1, %v916_v35 }
 0x35f   : > { %2931 = vmatpush3.bf16.xpose.msk.msra.mxu0 %vm3895_vm2, %v2926_v16  ;;  %2844 = vmatprep.mubr.msk.f32.mxu0 %vm1455_vm1, %v849_v9 }
 0x360   : > { %2937 = vmatpush3.bf16.xpose.msk.msra.mxu1 %vm3895_vm2, %v2932_v17  ;;  %2851 = vmatprep.mubr.msk.f32.mxu1 %vm1455_vm1, %v850_v10 }
 0x366   : > { %2845 = vmatmul.mubr.msk.f32.vlgmr.msra.gmra.mrb[6].mxu0 %vm1455_vm1, %v917_v36 }
 0x367   : > { %2852 = vmatmul.mubr.msk.f32.vlgmr.msra.gmra.mrb[4].mxu1 %vm1455_vm1, %v918_v37 }
 0x431   : > { %v2832_v30 = vpop.f32.mrb[4].mxu0  ;;  %v2839_v9 = vpop.f32.mrb[2].mxu1 }
 0x432   : > { %v1534_v31 = vpop.f32.mrb[5].mxu0  ;;  %v1621_v34 = vpop.f32.mrb[3].mxu1  ;;  %v1813_v35 = vsel %vm1455_vm1, %v2839_v9, -inf  ;;  %v1807_v63 = vsel %vm1455_vm1, %v2832_v30, -inf }
 0x433   : > { %1814 = vmax.xlane.f32.xlu0 %v1813_v35  ;;  %1808 = vmax.xlane.f32.xlu1 %v1807_v63  ;;  %v1810_v0 = vsel %vm1455_vm1, %v1621_v34, -inf  ;;  %v1804_v10 = vsel %vm1455_vm1, %v1534_v31, -inf }
 0x437   : > { %1811 = vmax.xlane.f32.xlu1 %v1810_v0  ;;  %1805 = vmax.xlane.f32.xlu0 %v1804_v10 }
 0x439   : > { %v2846_v36 = vpop.f32.mrb[6].mxu0 }
 0x43a   : > { %v2853_v32 = vpop.f32.mrb[4].mxu1  ;;  %v1708_v33 = vpop.f32.mrb[7].mxu0  ;;  %v1819_v20 = vsel %vm1455_vm1, %v2846_v36, -inf }
 0x43b   : > { %v1795_v37 = vpop.f32.mrb[5].mxu1  ;;  %v1825_v18 = vsel %vm1455_vm1, %v2853_v32, -inf  ;;  %v1816_v22 = vsel %vm1455_vm1, %v1708_v33, -inf }
 0x43c   : > { %1826 = vmax.xlane.f32.xlu1 %v1825_v18  ;;  %v1822_v19 = vsel %vm1455_vm1, %v1795_v37, -inf }
 0x43d   : > { %1823 = vmax.xlane.f32.xlu0 %v1822_v19 }
 0x440   : > { %1820 = vmax.xlane.f32.xlu1 %v1819_v20 }
 0x441   : > { %1817 = vmax.xlane.f32.xlu0 %v1816_v22 }
 0x451   : > { %1219 = vrot.lane.b32.xlu1 %v3777_v3, %s3415_s13 }
 0x457   : > { %1217 = vrot.lane.b32.xlu0 %v3779_v5, %s3415_s13  ;;  %s3422_s13 = smov [#allocation15]  }
 0x458   : > { %s3327_s27 = sshll.u32 %s3422_s13, 4  ;;  %s3328_s27 = int_to_ptr.vmem [resolvable:$false] %s3327_s27 }
 0x459   : > { %s3329_s28 = scalar_lea.vmem %s3328_s27, 512  ;;  %p3330_p11 = scmp.lt.s32.totalorder %s4085_s18, %s3328_s27 }
 0x45a   : > { %p3331_p12 = scmp.lt.s32.totalorder %s3329_s28, %s3323_s24 }
 0x45c   : > { %p3332_p13 = por %p3331_p12, %p3330_p11 }
 0x45e   : > { %p3333_p8 = pnand %p3332_p13, %p3326_p1 }
 0x4c0   : > { %v1815_v23 = vpop.xlane.xlu0 %1814  ;;  %v1809_v25 = vpop.xlane.xlu1 %1808 }
 0x4c1   : > { %v1831_v26 = vsub.f32 %v2839_v9, %v1815_v23  ;;  %v1829_v27 = vsub.f32 %v2832_v30, %v1809_v25 }
 0x4c3   : > { %v1842_v29 = vmul.f32 1.442695, %v1831_v26  ;;  %v1838_v38 = vmul.f32 1.442695, %v1829_v27 }
 0x4c4   : > { %v1812_v39 = vpop.xlane.xlu1 %1811  ;;  %v1806_v40 = vpop.xlane.xlu0 %1805 }
 0x4c5   : > { %3079 = vpow2.f32 %v1842_v29  ;;  %v1830_v41 = vsub.f32 %v1621_v34, %v1812_v39  ;;  %v1828_v42 = vsub.f32 %v1534_v31, %v1806_v40 }
 0x4c6   : > { %3081 = vpow2.f32 %v1838_v38 }
 0x4c7   : > { %v1840_v43 = vmul.f32 1.442695, %v1830_v41  ;;  %v1836_v44 = vmul.f32 1.442695, %v1828_v42 }
 0x4c9   : > { %3083 = vpow2.f32 %v1840_v43  ;;  %v1827_v45 = vpop.xlane.xlu1 %1826 }
 0x4ca   : > { %3085 = vpow2.f32 %v1836_v44  ;;  %v1835_v46 = vsub.f32 %v2853_v32, %v1827_v45  ;;  %v1824_v47 = vpop.xlane.xlu0 %1823 }
 0x4cb   : > { %v1834_v48 = vsub.f32 %v1795_v37, %v1824_v47 }
 0x4cc   : > { %v1850_v49 = vmul.f32 1.442695, %v1835_v46 }
 0x4cd   : > { %v1848_v51 = vmul.f32 1.442695, %v1834_v48  ;;  %v1821_v52 = vpop.xlane.xlu1 %1820 }
 0x4ce   : > { %v1833_v54 = vsub.f32 %v2846_v36, %v1821_v52  ;;  %v1818_v55 = vpop.xlane.xlu0 %1817 }
 0x4cf   : > { %v3955_v56 = vpop.eup %3079  ;;  %3087 = vpow2.f32 %v1848_v51  ;;  %v1832_v57 = vsub.f32 %v1708_v33, %v1818_v55 }
 0x4d0   : > { %v3957_v58 = vpop.eup %3081  ;;  %3089 = vpow2.f32 %v1850_v49  ;;  %v1846_v59 = vmul.f32 1.442695, %v1833_v54  ;;  %v1861_v60 = vsel %vm1455_vm1, %v3955_v56, 0.0 }
 0x4d1   : > { %v1844_v1 = vmul.f32 1.442695, %v1832_v57  ;;  %v1220_v4 = vpop.permute.xlu1 %1219  ;;  %1862 = vadd.xlane.f32.xlu1 %v1861_v60  ;;  %v1855_v5 = vsel %vm1455_vm1, %v3957_v58, 0.0 }
 0x4d2   : > { %3091 = vpow2.f32 %v1846_v59  ;;  %v1304_v7 = vcombine.high %v1220_v4, %v3414_v28  ;;  %v1311_v8 = vrot.slane %v1220_v4, %v3792_v21  ;;  %v1218_v11 = vpop.permute.xlu0 %1217 }
 0x4d3   : > { %v3969_v12 = vpop.eup %3083  ;;  %3093 = vpow2.f32 %v1844_v1  ;;  %v1238_v3 = vcombine.high %v1218_v11, %v3414_v28  ;;  %v1245_v13 = vrot.slane %v1218_v11, %v3792_v21 }
 0x4d4   : > { %v3975_v14 = vpop.eup %3085  ;;  %v1318_v15 = vrot.slane %v1304_v7, %v3792_v21  ;;  %v1319_v16 = vcombine.low %v1296_v61, %v1311_v8  ;;  %v1320_v17 = vcombine.high %v1296_v61, %v1311_v8  ;;  %v1858_v30 = vsel %vm1455_vm1, %v3969_v12, 0.0 }
 0x4d5   : > { %v1252_v9 = vrot.slane %v1238_v3, %v3792_v21  ;;  %v1253_v31 = vcombine.low %v1230_v2, %v1245_v13  ;;  %v1254_v34 = vcombine.high %v1230_v2, %v1245_v13  ;;  %1856 = vadd.xlane.f32.xlu1 %v1855_v5  ;;  %1859 = vadd.xlane.f32.xlu0 %v1858_v30  ;;  %v1852_v35 = vsel %vm1455_vm1, %v3975_v14, 0.0 }
 0x4d6   : > { %v1327_v63 = vrot.slane %v1319_v16, %v3795_v24  ;;  %v1334_v0 = vrot.slane %v1320_v17, %v3795_v24  ;;  %v1335_v10 = vcombine.low %v1303_v62, %v1318_v15  ;;  %v1336_v36 = vcombine.high %v1303_v62, %v1318_v15 }
 0x4d7   : > { %v1261_v32 = vrot.slane %v1253_v31, %v3795_v24  ;;  %v1268_v33 = vrot.slane %v1254_v34, %v3795_v24  ;;  %v1269_v37 = vcombine.low %v1237_v6, %v1252_v9  ;;  %v1270_v18 = vcombine.high %v1237_v6, %v1252_v9 }
 0x4d8   : > { %v1343_v19 = vrot.slane %v1335_v10, %v3795_v24  ;;  %v1350_v20 = vrot.slane %v1336_v36, %v3795_v24  ;;  %v1405_v22 = vcombine.low %v1327_v63, %v1334_v0  ;;  %v2726_v23 = vcombine.high %v1327_v63, %v1334_v0 }
 0x4d9   : > { %v3989_v25 = vpop.eup %3087  ;;  %v1277_v26 = vrot.slane %v1269_v37, %v3795_v24  ;;  %v1284_v27 = vrot.slane %v1270_v18, %v3795_v24  ;;  %v1355_v29 = vcombine.low %v1261_v32, %v1268_v33  ;;  %v2724_v38 = vcombine.high %v1261_v32, %v1268_v33  ;;  %1853 = vadd.xlane.f32.xlu0 %v1852_v35 }
 0x4da   : > { %v3993_v39 = vpop.eup %3089  ;;  %v1412_v40 = vrot.slane %v1405_v22, %v3792_v21  ;;  %v1420_v41 = vrot.slane %v2726_v23, %v3792_v21  ;;  %v1421_v42 = vcombine.low %v1343_v19, %v1350_v20  ;;  %v2727_v43 = vcombine.high %v1343_v19, %v1350_v20 }
 0x4db   : > { %v1362_v44 = vrot.slane %v1355_v29, %v3792_v21  ;;  %v1370_v45 = vrot.slane %v2724_v38, %v3792_v21  ;;  %v1371_v46 = vcombine.low %v1277_v26, %v1284_v27  ;;  %v2725_v47 = vcombine.high %v1277_v26, %v1284_v27 }
 0x4dc   : > { %v3999_v48 = vpop.eup %3091  ;;  %v1428_v49 = vrot.slane %v1421_v42, %v3792_v21  ;;  %v1436_v50 = vrot.slane %v2727_v43, %v3792_v21  ;;  %v1437_v51 = vcombine.low %v1412_v40, %v1420_v41  ;;  %v1870_v52 = vsel %vm1455_vm1, %v3989_v25, 0.0 }
 0x4dd   : > { %v4005_v53 = vpop.eup %3093  ;;  %v1378_v54 = vrot.slane %v1371_v46, %v3792_v21  ;;  %v1386_v55 = vrot.slane %v2725_v47, %v3792_v21  ;;  %v1387_v57 = vcombine.low %v1362_v44, %v1370_v45  ;;  %1871 = vadd.xlane.f32.xlu1 %v1870_v52  ;;  %v1873_v59 = vsel %vm1455_vm1, %v3993_v39, 0.0 }
 0x4de   : > { %1874 = vadd.xlane.f32.xlu0 %v1873_v59  ;;  %v1867_v60 = vsel %vm1455_vm1, %v3999_v48, 0.0  ;;  %v1445_v61 = vcombine.low %v1428_v49, %v1436_v50  ;;  %v1444_v2 = vrot.slane %v1437_v51, %v3795_v24  ;;  %v1864_v4 = vsel %vm1455_vm1, %v4005_v53, 0.0 }
 0x4df   : > { %v1395_v62 = vcombine.low %v1378_v54, %v1386_v55  ;;  %v1394_v6 = vrot.slane %v1387_v57, %v3795_v24  ;;  %v2217_v27 = vstv %s2216_s7 }
 0x4e0   : > { %v1452_v1 = vrot.slane %v1445_v61, %v3795_v24 }
 0x4e1   : > { %1868 = vadd.xlane.f32.xlu1 %v1867_v60  ;;  %v1402_v7 = vrot.slane %v1395_v62, %v3795_v24 }
 0x4e2   : > { %1865 = vadd.xlane.f32.xlu0 %v1864_v4  ;;  %v1453_v8 = vcombine.low %v1444_v2, %v1452_v1  ;;  %v1454_v11 = vcombine.high %v1444_v2, %v1452_v1 }
 0x4e3   : > { %v1403_v3 = vcombine.low %v1394_v6, %v1402_v7  ;;  %v1404_v13 = vcombine.high %v1394_v6, %v1402_v7 }
 0x4e5   : > { %v2938_v5 = vpack.c.bf16 %v1453_v8, %v1403_v3  ;;  %v2946_v15 = vpack.c.bf16 %v1454_v11, %v1404_v13 }
 0x4e7   : > { %2939 = vmatprep.subr.bf16.mxu0 %v2938_v5  ;;  %2943 = vmatprep.subr.bf16.mxu1 %v2938_v5 }
 0x4e8   : > { %2941 = vmatpush3.bf16.msra.mxu0 %v2938_v5  ;;  %2945 = vmatpush3.bf16.msra.mxu1 %v2938_v5 }
 0x4e9   : > { %2947 = vmatprep.subr.bf16.mxu0 %v2946_v15  ;;  %2951 = vmatprep.subr.bf16.mxu1 %v2946_v15 }
 0x55e   : > { %v1863_v16 = vpop.xlane.xlu1 %1862 }
 0x55f   : > { %3095 = vrcp.f32 %v1863_v16 }
 0x562   : > { %v1860_v17 = vpop.xlane.xlu0 %1859  ;;  %v1857_v30 = vpop.xlane.xlu1 %1856 }
 0x563   : > { %3097 = vrcp.f32 %v1860_v17 }
 0x564   : > { %3099 = vrcp.f32 %v1857_v30 }
 0x566   : > { %v1854_v9 = vpop.xlane.xlu0 %1853 }
 0x567   : > { %3101 = vrcp.f32 %v1854_v9  ;;  %v2752_v9 = vld [vmem:[#allocation14] ss:$0 sm:$0xff] }
 0x569   : > { %v3096_v35 = vpop.eup %3095 }
 0x56a   : > { %v1872_v31 = vpop.xlane.xlu1 %1871  ;;  %v1883_v33 = vmul.f32 %v3096_v35, %v3955_v56 }
 0x56b   : > { %3103 = vrcp.f32 %v1872_v31  ;;  %v1875_v34 = vpop.xlane.xlu0 %1874 }
 0x56c   : > { %3105 = vrcp.f32 %v1875_v34 }
 0x56d   : > { %v3098_v63 = vpop.eup %3097 }
 0x56e   : > { %v1869_v0 = vpop.xlane.xlu1 %1868  ;;  %v1881_v36 = vmul.f32 %v3098_v63, %v3969_v12  ;;  %v3100_v32 = vpop.eup %3099 }
 0x56f   : > { %3107 = vrcp.f32 %v1869_v0  ;;  %v1866_v10 = vpop.xlane.xlu0 %1865  ;;  %v1879_v19 = vmul.f32 %v3100_v32, %v3957_v58 }
 0x570   : > { %3109 = vrcp.f32 %v1866_v10  ;;  %2865 = vmatprep.mubr.msk.f32.mxu1 %vm1455_vm1, %v1881_v36 }
 0x571   : > { %v3102_v37 = vpop.eup %3101  ;;  %2866 = vmatmul.mubr.msk.f32.vlgmr.msra.gmra.mrb[6].mxu1 %vm1455_vm1, %v1883_v33 }
 0x572   : > { %v1877_v18 = vmul.f32 %v3102_v37, %v3975_v14  ;;  %2953 = vmatpush3.bf16.msra.mxu1 %v2946_v15 }
 0x574   : > { %2858 = vmatprep.mubr.msk.f32.mxu0 %vm1455_vm1, %v1877_v18 }
 0x575   : > { %v3104_v20 = vpop.eup %3103  ;;  %2859 = vmatmul.mubr.msk.f32.vlgmr.msra.gmra.mrb[8].mxu0 %vm1455_vm1, %v1879_v19 }
 0x576   : > { %v3106_v12 = vpop.eup %3105  ;;  %2949 = vmatpush3.bf16.msra.mxu0 %v2946_v15  ;;  %v1889_v56 = vmul.f32 %v3104_v20, %v3989_v25 }
 0x577   : > { %v1891_v22 = vmul.f32 %v3106_v12, %v3993_v39 }
 0x578   : > { %2879 = vmatprep.mubr.msk.f32.mxu1 %vm1455_vm1, %v1889_v56 }
 0x579   : > { %v3108_v23 = vpop.eup %3107  ;;  %2880 = vmatmul.mubr.msk.f32.vlgmr.msra.gmra.mrb[8].mxu1 %vm1455_vm1, %v1891_v22 }
 0x57a   : > { %v3110_v14 = vpop.eup %3109  ;;  %v1887_v26 = vmul.f32 %v3108_v23, %v3999_v48 }
 0x57b   : > { %v1885_v58 = vmul.f32 %v3110_v14, %v4005_v53 }
 0x57d   : > { %2872 = vmatprep.mubr.msk.f32.mxu0 %vm1455_vm1, %v1885_v58 }
 0x57e   : > { %2873 = vmatmul.mubr.msk.f32.vlgmr.msra.gmra.mrb[10].mxu0 %vm1455_vm1, %v1887_v26 }
 0x644   : > { %v2867_v29 = vpop.f32.mrb[6].mxu1 }
 0x645   : > { %v2045_v25 = vpop.f32.mrb[7].mxu1  ;;  %v2219_v38 = vmul.f32 %v2867_v29, %v2217_v27 }
 0x646   : > { %v2218_v39 = vmul.f32 %v2217_v27, %v2045_v25 }
 0x648   : > { %v2860_v40 = vpop.f32.mrb[8].mxu0 }
 0x649   : > { %v2223_v41 = vsub.f32 %v2860_v40, %v2219_v38  ;;  %v1964_v42 = vpop.f32.mrb[9].mxu0 }
 0x64a   : > { %v2222_v43 = vsub.f32 %v1964_v42, %v2218_v39 }
 0x64b   : > { %v2228_v44 = vmul.f32 %v2223_v41, %v2223_v41 }
 0x64c   : > { %v2881_v45 = vpop.f32.mrb[8].mxu1  ;;  %v2227_v46 = vmul.f32 %v2222_v43, %v2222_v43 }
 0x64d   : > { %v2207_v47 = vpop.f32.mrb[9].mxu1  ;;  %v2235_v48 = vsel %vm2231_vm3, %v2228_v44, 0.0  ;;  %v2221_v50 = vmul.f32 %v2881_v45, %v2217_v27 }
 0x64e   : > { %2236 = vadd.xlane.f32.xlu1 %v2235_v48  ;;  %v2232_v49 = vsel %vm2231_vm3, %v2227_v46, 0.0  ;;  %v2220_v51 = vmul.f32 %v2217_v27, %v2207_v47 }
 0x64f   : > { %2233 = vadd.xlane.f32.xlu0 %v2232_v49 }
 0x651   : > { %v2874_v52 = vpop.f32.mrb[10].mxu0 }
 0x652   : > { %v2225_v53 = vsub.f32 %v2874_v52, %v2221_v50  ;;  %v2126_v54 = vpop.f32.mrb[11].mxu0 }
 0x653   : > { %v2224_v55 = vsub.f32 %v2126_v54, %v2220_v51 }
 0x654   : > { %v2230_v57 = vmul.f32 %v2225_v53, %v2225_v53 }
 0x655   : > { %v2229_v59 = vmul.f32 %v2224_v55, %v2224_v55 }
 0x656   : > { %v2241_v60 = vsel %vm2231_vm3, %v2230_v57, 0.0 }
 0x657   : > { %2242 = vadd.xlane.f32.xlu1 %v2241_v60  ;;  %v2238_v61 = vsel %vm2231_vm3, %v2229_v59, 0.0 }
 0x658   : > { %2239 = vadd.xlane.f32.xlu0 %v2238_v61 }
 0x6db   : > { %v2237_v62 = vpop.xlane.xlu1 %2236 }
 0x6dc   : > { %v2246_v2 = vmul.f32 0.03125, %v2237_v62  ;;  %v2234_v1 = vpop.xlane.xlu0 %2233 }
 0x6dd   : > { %v2245_v4 = vmul.f32 0.03125, %v2234_v1 }
 0x6de   : > { %v2250_v6 = vadd.f32 1e-05, %v2246_v2 }
 0x6df   : > { %v2249_v7 = vadd.f32 1e-05, %v2245_v4 }
 0x6e0   : > { %3111 = vrsqrt.f32 %v2250_v6 }
 0x6e1   : > { %3113 = vrsqrt.f32 %v2249_v7 }
 0x6e4   : > { %v2243_v8 = vpop.xlane.xlu1 %2242 }
 0x6e5   : > { %v2248_v11 = vmul.f32 0.03125, %v2243_v8  ;;  %v2240_v3 = vpop.xlane.xlu0 %2239 }
 0x6e6   : > { %v2247_v13 = vmul.f32 0.03125, %v2240_v3 }
 0x6e7   : > { %v2252_v5 = vadd.f32 1e-05, %v2248_v11 }
 0x6e8   : > { %v2251_v15 = vadd.f32 1e-05, %v2247_v13 }
 0x6e9   : > { %3115 = vrsqrt.f32 %v2252_v5 }
 0x6ea   : > { %v3112_v16 = vpop.eup %3111  ;;  %3117 = vrsqrt.f32 %v2251_v15 }
 0x6eb   : > { %v3114_v17 = vpop.eup %3113  ;;  %v2258_v30 = vmul.f32 %v3112_v16, %v2223_v41 }
 0x6ec   : > { %v2257_v31 = vmul.f32 %v3114_v17, %v2222_v43 }
 0x6ed   : > { %v2268_v34 = vmul.f32 %v2752_v9, %v2258_v30 }
 0x6ee   : > { %v2267_v35 = vmul.f32 %v2752_v9, %v2257_v31 }
 0x6ef   : > { %v2272_v10 = vmul.f32 0.64449096, %v2268_v34 }
 0x6f0   : > { %v2271_v32 = vmul.f32 0.64449096, %v2267_v35 }
 0x6f1   : > { %v2341_v19 = vcombine.high %v2272_v10, %v3414_v28  ;;  %v2348_v22 = vrot.slane %v2272_v10, %v3792_v21 }
 0x6f2   : > { %v2275_v12 = vcombine.high %v2271_v32, %v3414_v28  ;;  %v2282_v58 = vrot.slane %v2271_v32, %v3792_v21 }
 0x6f3   : > { %v3116_v63 = vpop.eup %3115  ;;  %v2355_v29 = vrot.slane %v2341_v19, %v3792_v21 }
 0x6f4   : > { %v3118_v0 = vpop.eup %3117  ;;  %v2260_v36 = vmul.f32 %v3116_v63, %v2225_v53  ;;  %v2289_v40 = vrot.slane %v2275_v12, %v3792_v21 }
 0x6f5   : > { %v2259_v33 = vmul.f32 %v3118_v0, %v2224_v55 }
 0x6f6   : > { %v2270_v37 = vmul.f32 %v2752_v9, %v2260_v36 }
 0x6f7   : > { %v2269_v18 = vmul.f32 %v2752_v9, %v2259_v33 }
 0x6f8   : > { %v2274_v20 = vmul.f32 0.64449096, %v2270_v37  ;;  %v3123_v37 = vld [vmem:[%s3739_s21 + $0x8] sm:$0xff] }
 0x6f9   : > { %v2273_v56 = vmul.f32 0.64449096, %v2269_v18 }
 0x6fa   : > { %v2356_v23 = vcombine.high %v2274_v20, %v3414_v28  ;;  %v2363_v14 = vrot.slane %v2274_v20, %v3792_v21  ;;  %v3124_v20 = vld [vmem:[%s3739_s21] sm:$0xff]  ;;  %s4083_s21 = scalar_lea.hbm %s4139_s8, %s2764_s11 }
 0x6fb   : > { %v2290_v26 = vcombine.high %v2273_v56, %v3414_v28  ;;  %v2297_v27 = vrot.slane %v2273_v56, %v3792_v21 }
 0x6fc   : > { %v2370_v25 = vrot.slane %v2356_v23, %v3792_v21  ;;  %v2371_v38 = vcombine.low %v2348_v22, %v2363_v14  ;;  %v2372_v39 = vcombine.high %v2348_v22, %v2363_v14 }
 0x6fd   : > { %v2304_v41 = vrot.slane %v2290_v26, %v3792_v21  ;;  %v2305_v42 = vcombine.low %v2282_v58, %v2297_v27  ;;  %v2306_v43 = vcombine.high %v2282_v58, %v2297_v27 }
 0x6fe   : > { %v2379_v44 = vrot.slane %v2371_v38, %v3795_v24  ;;  %v2386_v45 = vrot.slane %v2372_v39, %v3795_v24  ;;  %v2387_v46 = vcombine.low %v2355_v29, %v2370_v25  ;;  %v2388_v28 = vcombine.high %v2355_v29, %v2370_v25  ;;  %v2757_v39 = vld [vmem:[#allocation12] ss:$0 sm:$0xff] }
 0x6ff   : > { %v2313_v47 = vrot.slane %v2305_v42, %v3795_v24  ;;  %v2320_v48 = vrot.slane %v2306_v43, %v3795_v24  ;;  %v2321_v49 = vcombine.low %v2289_v40, %v2304_v41  ;;  %v2322_v50 = vcombine.high %v2289_v40, %v2304_v41 }
 0x700   : > { %v2395_v51 = vrot.slane %v2387_v46, %v3795_v24  ;;  %v2402_v52 = vrot.slane %v2388_v28, %v3795_v24  ;;  %v2457_v53 = vcombine.low %v2379_v44, %v2386_v45  ;;  %v2755_v54 = vcombine.high %v2379_v44, %v2386_v45 }
 0x701   : > { %v2329_v55 = vrot.slane %v2321_v49, %v3795_v24  ;;  %v2336_v57 = vrot.slane %v2322_v50, %v3795_v24  ;;  %v2407_v59 = vcombine.low %v2313_v47, %v2320_v48  ;;  %v2753_v60 = vcombine.high %v2313_v47, %v2320_v48 }
 0x702   : > { %v2464_v61 = vrot.slane %v2457_v53, %v3792_v21  ;;  %v2472_v62 = vrot.slane %v2755_v54, %v3792_v21  ;;  %v2473_v2 = vcombine.low %v2395_v51, %v2402_v52  ;;  %v2756_v1 = vcombine.high %v2395_v51, %v2402_v52 }
 0x703   : > { %v2414_v4 = vrot.slane %v2407_v59, %v3792_v21  ;;  %v2422_v6 = vrot.slane %v2753_v60, %v3792_v21  ;;  %v2423_v7 = vcombine.low %v2329_v55, %v2336_v57  ;;  %v2754_v8 = vcombine.high %v2329_v55, %v2336_v57 }
 0x704   : > { %v2480_v11 = vrot.slane %v2473_v2, %v3792_v21  ;;  %v2488_v3 = vrot.slane %v2756_v1, %v3792_v21  ;;  %v2489_v13 = vcombine.low %v2464_v61, %v2472_v62 }
 0x705   : > { %v2430_v5 = vrot.slane %v2423_v7, %v3792_v21  ;;  %v2438_v15 = vrot.slane %v2754_v8, %v3792_v21  ;;  %v2439_v16 = vcombine.low %v2414_v4, %v2422_v6 }
 0x706   : > { %v2497_v17 = vcombine.low %v2480_v11, %v2488_v3  ;;  %v2496_v9 = vrot.slane %v2489_v13, %v3795_v24 }
 0x707   : > { %v2447_v30 = vcombine.low %v2430_v5, %v2438_v15  ;;  %v2446_v34 = vrot.slane %v2439_v16, %v3795_v24 }
 0x708   : > { %v2504_v31 = vrot.slane %v2497_v17, %v3795_v24 }
 0x709   : > { %v2454_v35 = vrot.slane %v2447_v30, %v3795_v24 }
 0x70a   : > { %v2506_v63 = vcombine.high %v2496_v9, %v2504_v31  ;;  %v2505_v0 = vcombine.low %v2496_v9, %v2504_v31 }
 0x70b   : > { %v2456_v10 = vcombine.high %v2446_v34, %v2454_v35  ;;  %v2455_v36 = vcombine.low %v2446_v34, %v2454_v35 }
 0x70c   : > { %2511 = vrot.lane.b32.xlu1 %v2506_v63, %s3421_s15 }
 0x70d   : > { %2509 = vrot.lane.b32.xlu0 %v2456_v10, %s3421_s15 }
 0x77e   : > { %v2512_v21 = vpop.permute.xlu1 %2511 }
 0x77f   : > { %v2516_v32 = vsel %vm2231_vm3, %v2505_v0, %v2512_v21  ;;  %v2510_v33 = vpop.permute.xlu0 %2509 }
 0x780   : > { %v2518_v18 = vadd.f32 %v3123_v37, %v2516_v32  ;;  %v2515_v19 = vsel %vm2231_vm3, %v2455_v36, %v2510_v33 }
 0x781   : > { %v2517_v12 = vadd.f32 %v3124_v20, %v2515_v19 }
 0x782   : > { %v2521_v56 = vmul.f32 %v2518_v18, %v2518_v18 }
 0x783   : > { %v2520_v24 = vmul.f32 %v2517_v12, %v2517_v12 }
 0x784   : > { %v2525_v22 = vsel %vm411_vm0, %v2521_v56, 0.0 }
 0x785   : > { %2526 = vadd.xlane.f32.xlu0 %v2525_v22  ;;  %v2522_v23 = vsel %vm411_vm0, %v2520_v24, 0.0 }
 0x786   : > { %2523 = vadd.xlane.f32.xlu1 %v2522_v23 }
 0x812   : > { %v2527_v14 = vpop.xlane.xlu0 %2526 }
 0x813   : > { %v2529_v58 = vmul.f32 0.015625, %v2527_v14  ;;  %v2524_v26 = vpop.xlane.xlu1 %2523 }
 0x814   : > { %v2528_v27 = vmul.f32 0.015625, %v2524_v26 }
 0x815   : > { %v2531_v29 = vadd.f32 1e-05, %v2529_v58 }
 0x816   : > { %v2530_v25 = vadd.f32 1e-05, %v2528_v27 }
 0x817   : > { %3119 = vrsqrt.f32 %v2531_v29 }
 0x818   : > { %3121 = vrsqrt.f32 %v2530_v25 }
 0x821   : > { %v3120_v38 = vpop.eup %3119 }
 0x822   : > { %v3122_v40 = vpop.eup %3121  ;;  %v2535_v41 = vmul.f32 %v3120_v38, %v2518_v18 }
 0x823   : > { %v2534_v42 = vmul.f32 %v3122_v40, %v2517_v12 }
 0x824   : > { %v2543_v43 = vmul.f32 %v2757_v39, %v2535_v41 }
 0x825   : > { %v2542_v44 = vmul.f32 %v2757_v39, %v2534_v42 }
 0x826   : > { %2545 = vst.msk [vmem:[%s405_s20 + $0x8] sm:$0xff] %vm411_vm0, %v2543_v43 }
 0x827   : > { %2544 = vst.msk [vmem:[%s405_s20] sm:$0xff] %vm411_vm0, %v2542_v44 }
 0x828   : > { %3336 = shalt.err (!%p3333_p8)
}
 0x829   : > { %s3337_s19 = scalar_lea.hbm %s4083_s21, 256  ;;  %s3341_s11 = scalar_lea.hbm %s4139_s8, 512 }
 0x82a   : > { %p3338_p7 = scmp.ne.s32.totalorder %s4083_s21, %s3337_s19  ;;  %p3342_p3 = scmp.lt.u32.totalorder %s4083_s21, %s4139_s8 }
 0x82b   : > { %p3343_p0 = scmp.lt.u32.totalorder %s3341_s11, %s3337_s19  ;;  %p3345_p6 = scmp.lt.u32.totalorder %s3337_s19, %s4083_s21 }
 0x82c   : > { %p3339_p9 = pnand %p3338_p7, %p4163_p5 }
 0x82d   : > { %p3344_p2 = por %p3343_p0, %p3342_p3 }
 0x82e   : > { %p3340_p4 = pneg %p3339_p9 }
 0x82f   : > { %p3346_p10 = por %p3345_p6, %p3344_p2 }
 0x831   : > { %p3347_p1 = pnand %p3346_p10, %p3340_p4 }
 0x833   : > { %3350 = shalt.err (!%p3347_p1)
}
 0x834   : > { %s3423_s25 = smov 128   ;;  %s3424_s24 = smov 8  }
 0x835   : > { %2980 = dma.vmem_to_hbm [thread:$0]  (%p4163_p5), %s4085_s18, 256, %s4083_s21, %s2547_s12, %s3423_s25, %s3423_s25, %s3424_s24  }
 0x836 PF: > { %s2575_s13 = sand.u32 1, %s3389_s29   ;;  %p4164_p11 = scmp.ne.s32.totalorder %s4151_s16, 0 }
 0x837   : > { %p4165_p12 = scmp.ge.s32.totalorder %s3401_s10, 2  ;;  %s2576_s27 = scalar_lea.sflag [#allocation5], %s2575_s13 }
 0x839   : > { %p3006_p13 = pnand %p4165_p12, %p4164_p11 }
 0x83b   : > { %3384 = dma.done.wait (!%p3006_p13), %s2576_s27, 256  }
 0x83c   : > { %3386 = vsyncadd (!%p3006_p13), %s2576_s27, 4294967040  ;;  %p25_p8 = scmp.ge.s32.totalorder %s3651_s14, 4   ;;  %s4166_s29 = smov %s3393_s30 }
 0x83d   : > { %s4167_s30 = smov %s3397_s9  ;;  %s4168_s9 = smov %s3662_s22 }
 0x83e   : > { %s4169_s10 = smov %s3651_s14  ;;  %27 = sbr.rel (!%p25_p8) target bundleno = 10 (0xa), region = 121 }
 0x845   :  { %2581 = vsyncpa [#allocation4], 1 }
 0x846   :  { %2583 = vsyncpa [#allocation4 + $0x1], 1 }
 0x847   :  { %2584 = vsyncpa [#allocation7], 1 }
 0x848   :  { %2585 = vsyncpa [#allocation10], 1 }
 0x849   :  { %2586 = vsyncpa [#allocation13], 1 }
 0x84a   :  { %2587 = vsyncpa [#allocation5], 1 }
 0x84b   :  { %2589 = vsyncpa [#allocation5 + $0x1], 1 }

</bundles_post_ra>
